<compile_context>
chip_gen: v7x
topology: tpu7x:2x2x1
jax: 0.10.0
libtpu: 0.0.40
codegen_flags: <defaults>
</compile_context>

<pallas_src>
import functools
import numpy as np

import jax
import jax.numpy as jnp
from jax.experimental import pallas as pl
from jax.experimental.pallas import tpu as pltpu

LN_EPS = 1e-5  # torch.nn.LayerNorm default

_STACK_KEYS = ('ln1_w', 'ln1_b', 'wqkv', 'bqkv', 'wo', 'bo',
               'ln2_w', 'ln2_b', 'w1', 'b1', 'w2', 'b2')


# ------------------------------ small helpers ---------------------------------
def _round_up(x, m):
    return ((x + m - 1) // m) * m


def _choose_tile(dim, target, align):
    """Largest multiple of `align` <= target that divides dim; else full dim."""
    if dim <= target:
        return dim
    t = (target // align) * align
    while t >= align:
        if dim % t == 0:
            return t
        t -= align
    return dim


def _vmem_limit_bytes():
    """Generation-aware scoped-VMEM budget (half of physical, capped)."""
    try:
        cap = pltpu.get_tpu_info().vmem_capacity_bytes
        return max(32 * 1024 * 1024, min(cap // 2, 96 * 1024 * 1024))
    except Exception:
        return 32 * 1024 * 1024   # conservative: safe on every generation


def _layernorm(x, w, b):
    mu = jnp.mean(x, axis=-1, keepdims=True)
    var = jnp.mean((x - mu) ** 2, axis=-1, keepdims=True)
    return (x - mu) * jax.lax.rsqrt(var + LN_EPS) * w + b


# -------------------- fused transformer-stack kernel --------------------------
def _stack_kernel(num_heads, B, T,
                  x_ref,
                  ln1w_ref, ln1b_ref, wqkv_ref, bqkv_ref, wo_ref, bo_ref,
                  ln2w_ref, ln2b_ref, w1_ref, b1_ref, w2_ref, b2_ref,
                  lnfw_ref, lnfb_ref,
                  o_ref):
    """One transformer block per inner grid step; o_ref holds the resident activation."""
    layer = pl.program_id(1)
    num_layers = pl.num_programs(1)

    @pl.when(layer == 0)
    def _():
        o_ref[...] = x_ref[...]

    x = o_ref[...]                                      # (B*T, C) f32, VMEM-resident
    BT, C = x.shape
    H = num_heads
    D = C // H
    scale = 1.0 / float(np.sqrt(D))

    # ------------------------- attention branch -------------------------------
    h = _layernorm(x, ln1w_ref[0], ln1b_ref[0])
    # Fused QKV: one lane-dense (BT,C)@(C,3C) MXU contraction, f32 accumulation.
    qkv = jnp.dot(h.astype(jnp.bfloat16), wqkv_ref[0],
                  preferred_element_type=jnp.float32) + bqkv_ref[0]     # (BT, 3C) f32

    # Per-head scores/context (contraction width is inherently D); statically
    # unrolled over heads so only one head's (B,T,T) score tile is live at once.
    # TODO(synk): for long sequences switch to a KV-tiled online-softmax loop.
    ctx_heads = []
    for hd in range(H):
        q_h = qkv[:, hd * D:(hd + 1) * D].reshape(B, T, D).astype(jnp.bfloat16)
        k_h = qkv[:, C + hd * D:C + (hd + 1) * D].reshape(B, T, D).astype(jnp.bfloat16)
        v_h = qkv[:, 2 * C + hd * D:2 * C + (hd + 1) * D].reshape(B, T, D).astype(jnp.bfloat16)
        s = jnp.einsum('btd,bsd->bts', q_h, k_h,
                       preferred_element_type=jnp.float32) * scale      # (B, T, T) f32
        s = s - jnp.max(s, axis=-1, keepdims=True)
        e = jnp.exp(s)                                                  # f32 (EUP)
        p = e * pl.reciprocal(jnp.sum(e, axis=-1, keepdims=True), approx=True)
        c_h = jnp.einsum('bts,bsd->btd', p.astype(jnp.bfloat16), v_h,
                         preferred_element_type=jnp.float32)            # (B, T, D)
        ctx_heads.append(c_h.reshape(B * T, D))

    # Merge heads along lanes (matches torch .view(B,T,H,D) column order) and do
    # ONE (BT,C)@(C,C) output projection: head sum accumulates inside the MXU.
    ctx2 = jnp.concatenate(ctx_heads, axis=-1).astype(jnp.bfloat16)      # (BT, C)
    attn = jnp.dot(ctx2, wo_ref[0],
                   preferred_element_type=jnp.float32) + bo_ref[0]
    x = x + attn

    # ---------------------------- MLP branch ----------------------------------
    h2 = _layernorm(x, ln2w_ref[0], ln2b_ref[0]).astype(jnp.bfloat16)
    m = jnp.dot(h2, w1_ref[0], preferred_element_type=jnp.float32) + b1_ref[0]
    m = 0.5 * m * (1.0 + jax.lax.erf(m * (1.0 / float(np.sqrt(2.0)))))   # exact GELU, f32
    y = jnp.dot(m.astype(jnp.bfloat16), w2_ref[0],
                preferred_element_type=jnp.float32) + b2_ref[0]
    xo = x + y

    @pl.when(layer < num_layers - 1)
    def _():
        o_ref[...] = xo

    @pl.when(layer == num_layers - 1)
    def _():
        # Final LayerNorm fused into the last layer step (head kernel stays matmul-only).
        o_ref[...] = _layernorm(xo, lnfw_ref[...], lnfb_ref[...])


# ------------------------------ LM-head kernel --------------------------------
def _head_kernel(x_ref, wh_ref, bh_ref, o_ref):
    o_ref[...] = jnp.dot(x_ref[...].astype(jnp.bfloat16), wh_ref[...],
                         preferred_element_type=jnp.float32) + bh_ref[...]


# --------------------------------- wrappers -----------------------------------
def run_blocks(x2, stack, lnf_w, lnf_b, num_heads, B, T, num_batch_tiles=1):
    BT, C = x2.shape
    plist = [stack[k] for k in _STACK_KEYS]
    L = plist[0].shape[0]

    # Optional leading "parallel" batch-tile axis (useful on v7x's 2 TensorCores;
    # keep 1 on v5e/v6e so per-layer weights stream from HBM exactly once).
    if B % num_batch_tiles != 0 or ((B // num_batch_tiles) * T) % 8 != 0:
        num_batch_tiles = 1
    Bt = B // num_batch_tiles
    rows = Bt * T

    def layer_spec(arr):
        n = arr.ndim
        return pl.BlockSpec((1,) + arr.shape[1:],
                            lambda b, l, n=n: (l,) + (0,) * (n - 1))

    kernel = functools.partial(_stack_kernel, num_heads, Bt, T)
    return pl.pallas_call(
        kernel,
        out_shape=jax.ShapeDtypeStruct((BT, C), jnp.float32),
        grid=(num_batch_tiles, L),
        in_specs=[pl.BlockSpec((rows, C), lambda b, l: (b, 0))]
                 + [layer_spec(a) for a in plist]
                 + [pl.BlockSpec((1, C), lambda b, l: (0, 0)),
                    pl.BlockSpec((1, C), lambda b, l: (0, 0))],
        out_specs=pl.BlockSpec((rows, C), lambda b, l: (b, 0)),
        input_output_aliases={0: 0},             # activation reuses its own HBM buffer
        compiler_params=pltpu.CompilerParams(
            dimension_semantics=("parallel", "arbitrary"),   # layers are sequential
            vmem_limit_bytes=_vmem_limit_bytes()),
    )(x2, *plist, lnf_w, lnf_b)


def run_head(x2, head_w, head_b):
    BT, C = x2.shape
    Vp = head_w.shape[-1]                        # already padded to a 128-multiple
    BT_pad = _round_up(BT, 8)
    if BT_pad != BT:
        x2 = jnp.pad(x2, ((0, BT_pad - BT), (0, 0)))
    tm = _choose_tile(BT_pad, 512, 8)
    tn = _choose_tile(Vp, 1024, 128)             # lane-dense vocab tiles
    # Vocab axis is the OUTER (slow) grid axis: each (C, tn) weight block is
    # streamed from HBM exactly once while row tiles cycle underneath it.
    grid = (Vp // tn, BT_pad // tm)
    return pl.pallas_call(
        _head_kernel,
        out_shape=jax.ShapeDtypeStruct((BT_pad, Vp), jnp.float32),
        grid=grid,
        in_specs=[
            pl.BlockSpec((tm, C), lambda j, i: (i, 0)),
            pl.BlockSpec((C, tn), lambda j, i: (0, j)),
            pl.BlockSpec((1, tn), lambda j, i: (0, j)),
        ],
        out_specs=pl.BlockSpec((tm, tn), lambda j, i: (i, j)),
        compiler_params=pltpu.CompilerParams(
            dimension_semantics=("parallel", "parallel"),
            vmem_limit_bytes=_vmem_limit_bytes()),
    )(x2, head_w, head_b)


def gpt_forward(idx, params, *, num_heads, vocab_size, num_batch_tiles=1):
    B, T = idx.shape
    C = params['tok_emb'].shape[-1]
    # Embedding gather + positional add (+ dropout == identity) stay in XLA glue.
    x = jnp.take(params['tok_emb'], idx, axis=0) + params['pos_emb'][:, :T, :]
    x2 = x.reshape(B * T, C).astype(jnp.float32)
    x2 = run_blocks(x2, params['stack'], params['lnf_w'], params['lnf_b'],
                    num_heads, B, T, num_batch_tiles)       # includes final LN
    logits2 = run_head(x2, params['head_w'], params['head_b'])
    return logits2[:B * T, :vocab_size].reshape(B, T, vocab_size)


# ------------------------------ parameter init --------------------------------
def init_params(key, vocab_size, cfg):
    C = cfg['embedding_dim']
    L = cfg['num_layers']
    S = cfg['block_size']

    def nrm(k, shape, scale=0.02):
        return (scale * jax.random.normal(k, shape)).astype(jnp.float32)

    keys = jax.random.split(key, 4 + L)

    # Pad the vocab so LM-head tiles are always lane-aligned 128-multiples.
    quantum = 1024 if vocab_size > 1024 else 128
    v_pad = _round_up(vocab_size, quantum)
    head_w = jnp.pad(nrm(keys[2], (C, vocab_size)), ((0, 0), (0, v_pad - vocab_size)))
    head_b = jnp.pad(nrm(keys[3], (1, vocab_size)), ((0, 0), (0, v_pad - vocab_size)))

    params = {
        'tok_emb': nrm(keys[0], (vocab_size, C)),
        'pos_emb': nrm(keys[1], (1, S, C)),
        'lnf_w': jnp.ones((1, C), jnp.float32),
        'lnf_b': jnp.zeros((1, C), jnp.float32),
        # MXU operands pre-cast to bf16; accumulation stays f32 in-kernel.
        'head_w': head_w.astype(jnp.bfloat16),
        'head_b': head_b,
    }

    per_layer = {k: [] for k in _STACK_KEYS}
    for l in range(L):
        ks = jax.random.split(keys[4 + l], 12)
        wq = nrm(ks[0], (C, C)); bq = nrm(ks[1], (1, C))
        wk = nrm(ks[2], (C, C)); bk = nrm(ks[3], (1, C))
        wv = nrm(ks[4], (C, C)); bv = nrm(ks[5], (1, C))
        wo = nrm(ks[6], (C, C)); bo = nrm(ks[7], (1, C))
        w1 = nrm(ks[8], (C, 4 * C)); b1 = nrm(ks[9], (1, 4 * C))
        w2 = nrm(ks[10], (4 * C, C)); b2 = nrm(ks[11], (1, C))

        per_layer['ln1_w'].append(jnp.ones((1, C), jnp.float32))
        per_layer['ln1_b'].append(jnp.zeros((1, C), jnp.float32))
        # Fused QKV weight: columns ordered [q | k | v]; within each, (head, head_dim)
        # exactly as nn.Linear + .view(B,T,H,D) interprets the output features.
        per_layer['wqkv'].append(jnp.concatenate([wq, wk, wv], axis=1))   # (C, 3C)
        per_layer['bqkv'].append(jnp.concatenate([bq, bk, bv], axis=1))   # (1, 3C)
        per_layer['wo'].append(wo)
        per_layer['bo'].append(bo)
        per_layer['ln2_w'].append(jnp.ones((1, C), jnp.float32))
        per_layer['ln2_b'].append(jnp.zeros((1, C), jnp.float32))
        per_layer['w1'].append(w1)
        per_layer['b1'].append(b1)
        per_layer['w2'].append(w2)
        per_layer['b2'].append(b2)

    matmul_keys = {'wqkv', 'wo', 'w1', 'w2'}
    stack = {}
    for k in _STACK_KEYS:
        arr = jnp.stack(per_layer[k], axis=0)        # leading L dim for the layer grid
        if k in matmul_keys:
            arr = arr.astype(jnp.bfloat16)
        stack[k] = arr
    params['stack'] = stack
    return params


# ------------------------------------ main -------------------------------------
if __name__ == "__main__":
    config = {
        'embedding_dim': 32,
        'num_heads': 4,
        'num_layers': 2,
        'block_size': 16,
        'dropout': 0.1,   # identity at inference
    }
    vocab_size = 64
    B, T = 2, 8

    key = jax.random.PRNGKey(0)
    k_param, k_idx = jax.random.split(key)
    params = init_params(k_param, vocab_size, config)
    idx = jax.random.randint(k_idx, (B, T), 0, vocab_size, dtype=jnp.int32)

    fwd = jax.jit(functools.partial(gpt_forward,
                                    num_heads=config['num_heads'],
                                    vocab_size=vocab_size,
                                    num_batch_tiles=1))
    logits = jax.block_until_ready(fwd(idx, params))
    assert logits.shape == (B, T, vocab_size)
    assert bool(jnp.all(jnp.isfinite(logits)))
    print("KERNEL_OK")
</pallas_src>

<mosaic_0001>
module attributes {stable_mosaic.version = 11 : i64} {
  func.func @_head_kernel(%arg0: i32, %arg1: i32, %arg2: memref<16x32xf32, #tpu.memory_space<vmem>>, %arg3: memref<32x128xbf16, #tpu.memory_space<vmem>>, %arg4: memref<1x128xf32, #tpu.memory_space<vmem>>, %arg5: memref<16x128xf32, #tpu.memory_space<vmem>>) attributes {dimension_semantics = [#tpu.dimension_semantics<parallel>, #tpu.dimension_semantics<parallel>], iteration_bounds = array<i64: 1, 1>, scalar_prefetch = 0 : i64, scratch_operands = 0 : i64, tpu.core_type = #tpu.core_type<tc>, window_params = [{transform_indices = @transform_0, window_bounds = array<i64: 16, 32>}, {transform_indices = @transform_1, window_bounds = array<i64: 32, 128>}, {transform_indices = @transform_2, window_bounds = array<i64: 1, 128>}, {transform_indices = @transform_3, window_bounds = array<i64: 16, 128>}]} {
    %c0 = arith.constant 0 : index
    %c0_0 = arith.constant 0 : index
    %0 = vector.load %arg2[%c0, %c0_0] : memref<16x32xf32, #tpu.memory_space<vmem>>, vector<16x32xf32>
    %1 = arith.truncf %0 : vector<16x32xf32> to vector<16x32xbf16>
    %c0_1 = arith.constant 0 : index
    %c0_2 = arith.constant 0 : index
    %2 = vector.load %arg3[%c0_1, %c0_2] : memref<32x128xbf16, #tpu.memory_space<vmem>>, vector<32x128xbf16>
    %cst = arith.constant dense<0.000000e+00> : vector<16x128xf32>
    %3 = tpu.matmul %1, %2, %cst {dimension_numbers = #tpu.dot_dimension_numbers<[1], [0], [0], [1], [0, 0, 1, 1], [], []>} : vector<16x32xbf16>, vector<32x128xbf16>, vector<16x128xf32> -> vector<16x128xf32>
    %c0_3 = arith.constant 0 : index
    %c0_4 = arith.constant 0 : index
    %4 = vector.load %arg4[%c0_3, %c0_4] : memref<1x128xf32, #tpu.memory_space<vmem>>, vector<1x128xf32>
    %5 = vector.broadcast %4 : vector<1x128xf32> to vector<16x128xf32>
    %6 = arith.addf %3, %5 : vector<16x128xf32>
    %c0_5 = arith.constant 0 : index
    %c0_6 = arith.constant 0 : index
    %7 = vector.load %arg5[%c0_5, %c0_6] : memref<16x128xf32, #tpu.memory_space<vmem>>, vector<16x128xf32>
    tpu.vector_store %arg5[%c0_5, %c0_6], %6 {strides = array<i32>} : memref<16x128xf32, #tpu.memory_space<vmem>>, vector<16x128xf32>,
    return
  }
  func.func @transform_0(%arg0: i32, %arg1: i32) -> (i32, i32) {
    %c0_i32 = arith.constant 0 : i32
    %c0_i32_0 = arith.constant 0 : i32
    return %arg1, %c0_i32 : i32, i32
  }
  func.func @transform_1(%arg0: i32, %arg1: i32) -> (i32, i32) {
    %c0_i32 = arith.constant 0 : i32
    %c0_i32_0 = arith.constant 0 : i32
    return %c0_i32, %arg0 : i32, i32
  }
  func.func @transform_2(%arg0: i32, %arg1: i32) -> (i32, i32) {
    %c0_i32 = arith.constant 0 : i32
    %c0_i32_0 = arith.constant 0 : i32
    return %c0_i32, %arg0 : i32, i32
  }
  func.func @transform_3(%arg0: i32, %arg1: i32) -> (i32, i32) {
    %c0_i32 = arith.constant 0 : i32
    return %arg1, %arg0 : i32, i32
  }
}

module attributes {stable_mosaic.version = 11 : i64} {
  func.func @_stack_kernel(%arg0: i32, %arg1: i32, %arg2: memref<16x32xf32, #tpu.memory_space<vmem>>, %arg3: memref<1x1x32xf32, #tpu.memory_space<vmem>>, %arg4: memref<1x1x32xf32, #tpu.memory_space<vmem>>, %arg5: memref<1x32x96xbf16, #tpu.memory_space<vmem>>, %arg6: memref<1x1x96xf32, #tpu.memory_space<vmem>>, %arg7: memref<1x32x32xbf16, #tpu.memory_space<vmem>>, %arg8: memref<1x1x32xf32, #tpu.memory_space<vmem>>, %arg9: memref<1x1x32xf32, #tpu.memory_space<vmem>>, %arg10: memref<1x1x32xf32, #tpu.memory_space<vmem>>, %arg11: memref<1x32x128xbf16, #tpu.memory_space<vmem>>, %arg12: memref<1x1x128xf32, #tpu.memory_space<vmem>>, %arg13: memref<1x128x32xbf16, #tpu.memory_space<vmem>>, %arg14: memref<1x1x32xf32, #tpu.memory_space<vmem>>, %arg15: memref<1x32xf32, #tpu.memory_space<vmem>>, %arg16: memref<1x32xf32, #tpu.memory_space<vmem>>, %arg17: memref<16x32xf32, #tpu.memory_space<vmem>>) attributes {dimension_semantics = [#tpu.dimension_semantics<parallel>, #tpu.dimension_semantics<arbitrary>], iteration_bounds = array<i64: 1, 2>, scalar_prefetch = 0 : i64, scratch_operands = 0 : i64, tpu.core_type = #tpu.core_type<tc>, window_params = [{transform_indices = @transform_0, window_bounds = array<i64: 16, 32>}, {transform_indices = @transform_1, window_bounds = array<i64: 1, 1, 32>}, {transform_indices = @transform_2, window_bounds = array<i64: 1, 1, 32>}, {transform_indices = @transform_3, window_bounds = array<i64: 1, 32, 96>}, {transform_indices = @transform_4, window_bounds = array<i64: 1, 1, 96>}, {transform_indices = @transform_5, window_bounds = array<i64: 1, 32, 32>}, {transform_indices = @transform_6, window_bounds = array<i64: 1, 1, 32>}, {transform_indices = @transform_7, window_bounds = array<i64: 1, 1, 32>}, {transform_indices = @transform_8, window_bounds = array<i64: 1, 1, 32>}, {transform_indices = @transform_9, window_bounds = array<i64: 1, 32, 128>}, {transform_indices = @transform_10, window_bounds = array<i64: 1, 1, 128>}, {transform_indices = @transform_11, window_bounds = array<i64: 1, 128, 32>}, {transform_indices = @transform_12, window_bounds = array<i64: 1, 1, 32>}, {pipeline_mode = #tpu.pipeline_mode<synchronous>, transform_indices = @transform_13, window_bounds = array<i64: 1, 32>}, {pipeline_mode = #tpu.pipeline_mode<synchronous>, transform_indices = @transform_14, window_bounds = array<i64: 1, 32>}, {transform_indices = @transform_15, window_bounds = array<i64: 16, 32>}]} {
    %c0_i32 = arith.constant 0 : i32
    %0 = arith.cmpi eq, %arg1, %c0_i32 : i32
    %1 = arith.extui %0 : i1 to i32
    %c0_i32_0 = arith.constant 0 : i32
    %2 = arith.cmpi ne, %1, %c0_i32_0 : i32
    scf.if %2 {
      %c0_77 = arith.constant 0 : index
      %c0_78 = arith.constant 0 : index
      %205 = vector.load %arg2[%c0_77, %c0_78] : memref<16x32xf32, #tpu.memory_space<vmem>>, vector<16x32xf32>
      %c0_79 = arith.constant 0 : index
      %c0_80 = arith.constant 0 : index
      %206 = vector.load %arg17[%c0_79, %c0_80] : memref<16x32xf32, #tpu.memory_space<vmem>>, vector<16x32xf32>
      tpu.vector_store %arg17[%c0_79, %c0_80], %205 {strides = array<i32>} : memref<16x32xf32, #tpu.memory_space<vmem>>, vector<16x32xf32>,
    } else {
    }
    %c0 = arith.constant 0 : index
    %c0_1 = arith.constant 0 : index
    %3 = vector.load %arg17[%c0, %c0_1] : memref<16x32xf32, #tpu.memory_space<vmem>>, vector<16x32xf32>
    %c0_2 = arith.constant 0 : index
    %c0_3 = arith.constant 0 : index
    %c0_4 = arith.constant 0 : index
    %4 = vector.load %arg3[%c0_2, %c0_3, %c0_4] : memref<1x1x32xf32, #tpu.memory_space<vmem>>, vector<1x1x32xf32>
    %5 = vector.shape_cast %4 : vector<1x1x32xf32> to vector<1x32xf32>
    %c0_5 = arith.constant 0 : index
    %c0_6 = arith.constant 0 : index
    %c0_7 = arith.constant 0 : index
    %6 = vector.load %arg4[%c0_5, %c0_6, %c0_7] : memref<1x1x32xf32, #tpu.memory_space<vmem>>, vector<1x1x32xf32>
    %7 = vector.shape_cast %6 : vector<1x1x32xf32> to vector<1x32xf32>
    %cst = arith.constant dense<0.000000e+00> : vector<16xf32>
    %8 = vector.multi_reduction <add>, %3, %cst [1] : vector<16x32xf32> to vector<16xf32>
    %9 = vector.shape_cast %8 : vector<16xf32> to vector<16x1xf32>
    %cst_8 = arith.constant 3.200000e+01 : f32
    %10 = vector.broadcast %cst_8 : f32 to vector<16x1xf32>
    %11 = arith.divf %9, %10 : vector<16x1xf32>
    %12 = vector.broadcast %11 : vector<16x1xf32> to vector<16x32xf32>
    %13 = arith.subf %3, %12 : vector<16x32xf32>
    %14 = arith.mulf %13, %13 : vector<16x32xf32>
    %cst_9 = arith.constant dense<0.000000e+00> : vector<16xf32>
    %15 = vector.multi_reduction <add>, %14, %cst_9 [1] : vector<16x32xf32> to vector<16xf32>
    %16 = vector.shape_cast %15 : vector<16xf32> to vector<16x1xf32>
    %cst_10 = arith.constant 3.200000e+01 : f32
    %17 = vector.broadcast %cst_10 : f32 to vector<16x1xf32>
    %18 = arith.divf %16, %17 : vector<16x1xf32>
    %19 = vector.broadcast %11 : vector<16x1xf32> to vector<16x32xf32>
    %20 = arith.subf %3, %19 : vector<16x32xf32>
    %cst_11 = arith.constant 9.99999974E-6 : f32
    %21 = vector.broadcast %cst_11 : f32 to vector<16x1xf32>
    %22 = arith.addf %18, %21 : vector<16x1xf32>
    %23 = math.rsqrt %22 : vector<16x1xf32>
    %24 = vector.broadcast %23 : vector<16x1xf32> to vector<16x32xf32>
    %25 = arith.mulf %20, %24 : vector<16x32xf32>
    %26 = vector.broadcast %5 : vector<1x32xf32> to vector<16x32xf32>
    %27 = arith.mulf %25, %26 : vector<16x32xf32>
    %28 = vector.broadcast %7 : vector<1x32xf32> to vector<16x32xf32>
    %29 = arith.addf %27, %28 : vector<16x32xf32>
    %30 = arith.truncf %29 : vector<16x32xf32> to vector<16x32xbf16>
    %c0_12 = arith.constant 0 : index
    %c0_13 = arith.constant 0 : index
    %c0_14 = arith.constant 0 : index
    %31 = vector.load %arg5[%c0_12, %c0_13, %c0_14] : memref<1x32x96xbf16, #tpu.memory_space<vmem>>, vector<1x32x96xbf16>
    %32 = vector.shape_cast %31 : vector<1x32x96xbf16> to vector<32x96xbf16>
    %cst_15 = arith.constant dense<0.000000e+00> : vector<16x96xf32>
    %33 = tpu.matmul %30, %32, %cst_15 {dimension_numbers = #tpu.dot_dimension_numbers<[1], [0], [0], [1], [0, 0, 1, 1], [], []>} : vector<16x32xbf16>, vector<32x96xbf16>, vector<16x96xf32> -> vector<16x96xf32>
    %c0_16 = arith.constant 0 : index
    %c0_17 = arith.constant 0 : index
    %c0_18 = arith.constant 0 : index
    %34 = vector.load %arg6[%c0_16, %c0_17, %c0_18] : memref<1x1x96xf32, #tpu.memory_space<vmem>>, vector<1x1x96xf32>
    %35 = vector.shape_cast %34 : vector<1x1x96xf32> to vector<1x96xf32>
    %36 = vector.broadcast %35 : vector<1x96xf32> to vector<16x96xf32>
    %37 = arith.addf %33, %36 : vector<16x96xf32>
    %38 = vector.extract_strided_slice %37 {offsets = [0, 0], sizes = [16, 8], strides = [1, 1]} : vector<16x96xf32> to vector<16x8xf32>
    %39 = vector.shape_cast %38 : vector<16x8xf32> to vector<2x8x8xf32>
    %40 = arith.truncf %39 : vector<2x8x8xf32> to vector<2x8x8xbf16>
    %41 = vector.extract_strided_slice %37 {offsets = [0, 32], sizes = [16, 8], strides = [1, 1]} : vector<16x96xf32> to vector<16x8xf32>
    %42 = vector.shape_cast %41 : vector<16x8xf32> to vector<2x8x8xf32>
    %43 = arith.truncf %42 : vector<2x8x8xf32> to vector<2x8x8xbf16>
    %44 = vector.extract_strided_slice %37 {offsets = [0, 64], sizes = [16, 8], strides = [1, 1]} : vector<16x96xf32> to vector<16x8xf32>
    %45 = vector.shape_cast %44 : vector<16x8xf32> to vector<2x8x8xf32>
    %46 = arith.truncf %45 : vector<2x8x8xf32> to vector<2x8x8xbf16>
    "tpu.trace_start"() <{level = 10 : i32, message = "btd,bsd->bts"}> : () -> ()
    %cst_19 = arith.constant dense<0.000000e+00> : vector<2x8x8xf32>
    %47 = tpu.matmul %40, %43, %cst_19 {dimension_numbers = #tpu.dot_dimension_numbers<[2], [2], [1], [1], [0, 0, 0, 1, 1, 1], [0], [0]>} : vector<2x8x8xbf16>, vector<2x8x8xbf16>, vector<2x8x8xf32> -> vector<2x8x8xf32>
    "tpu.trace_stop"() : () -> ()
    %cst_20 = arith.constant 0.353553385 : f32
    %48 = vector.broadcast %cst_20 : f32 to vector<2x8x8xf32>
    %49 = arith.mulf %47, %48 : vector<2x8x8xf32>
    %cst_21 = arith.constant dense<0xFF800000> : vector<2x8xf32>
    %50 = vector.multi_reduction <maximumf>, %49, %cst_21 [2] : vector<2x8x8xf32> to vector<2x8xf32>
    %51 = vector.shape_cast %50 : vector<2x8xf32> to vector<2x8x1xf32>
    %52 = vector.broadcast %51 : vector<2x8x1xf32> to vector<2x8x8xf32>
    %53 = arith.subf %49, %52 : vector<2x8x8xf32>
    %54 = math.exp %53 : vector<2x8x8xf32>
    %cst_22 = arith.constant dense<0.000000e+00> : vector<2x8xf32>
    %55 = vector.multi_reduction <add>, %54, %cst_22 [2] : vector<2x8x8xf32> to vector<2x8xf32>
    %56 = vector.shape_cast %55 : vector<2x8xf32> to vector<2x8x1xf32>
    %57 = tpu.reciprocal %56 {approx = true} : vector<2x8x1xf32> -> vector<2x8x1xf32>
    %58 = vector.broadcast %57 : vector<2x8x1xf32> to vector<2x8x8xf32>
    %59 = arith.mulf %54, %58 : vector<2x8x8xf32>
    %60 = arith.truncf %59 : vector<2x8x8xf32> to vector<2x8x8xbf16>
    "tpu.trace_start"() <{level = 10 : i32, message = "bts,bsd->btd"}> : () -> ()
    %cst_23 = arith.constant dense<0.000000e+00> : vector<2x8x8xf32>
    %61 = tpu.matmul %60, %46, %cst_23 {dimension_numbers = #tpu.dot_dimension_numbers<[2], [1], [1], [2], [0, 0, 0, 1, 1, 2], [0], [0]>} : vector<2x8x8xbf16>, vector<2x8x8xbf16>, vector<2x8x8xf32> -> vector<2x8x8xf32>
    "tpu.trace_stop"() : () -> ()
    %62 = vector.shape_cast %61 : vector<2x8x8xf32> to vector<16x8xf32>
    %63 = vector.extract_strided_slice %37 {offsets = [0, 8], sizes = [16, 8], strides = [1, 1]} : vector<16x96xf32> to vector<16x8xf32>
    %64 = vector.shape_cast %63 : vector<16x8xf32> to vector<2x8x8xf32>
    %65 = arith.truncf %64 : vector<2x8x8xf32> to vector<2x8x8xbf16>
    %66 = vector.extract_strided_slice %37 {offsets = [0, 40], sizes = [16, 8], strides = [1, 1]} : vector<16x96xf32> to vector<16x8xf32>
    %67 = vector.shape_cast %66 : vector<16x8xf32> to vector<2x8x8xf32>
    %68 = arith.truncf %67 : vector<2x8x8xf32> to vector<2x8x8xbf16>
    %69 = vector.extract_strided_slice %37 {offsets = [0, 72], sizes = [16, 8], strides = [1, 1]} : vector<16x96xf32> to vector<16x8xf32>
    %70 = vector.shape_cast %69 : vector<16x8xf32> to vector<2x8x8xf32>
    %71 = arith.truncf %70 : vector<2x8x8xf32> to vector<2x8x8xbf16>
    "tpu.trace_start"() <{level = 10 : i32, message = "btd,bsd->bts"}> : () -> ()
    %cst_24 = arith.constant dense<0.000000e+00> : vector<2x8x8xf32>
    %72 = tpu.matmul %65, %68, %cst_24 {dimension_numbers = #tpu.dot_dimension_numbers<[2], [2], [1], [1], [0, 0, 0, 1, 1, 1], [0], [0]>} : vector<2x8x8xbf16>, vector<2x8x8xbf16>, vector<2x8x8xf32> -> vector<2x8x8xf32>
    "tpu.trace_stop"() : () -> ()
    %cst_25 = arith.constant 0.353553385 : f32
    %73 = vector.broadcast %cst_25 : f32 to vector<2x8x8xf32>
    %74 = arith.mulf %72, %73 : vector<2x8x8xf32>
    %cst_26 = arith.constant dense<0xFF800000> : vector<2x8xf32>
    %75 = vector.multi_reduction <maximumf>, %74, %cst_26 [2] : vector<2x8x8xf32> to vector<2x8xf32>
    %76 = vector.shape_cast %75 : vector<2x8xf32> to vector<2x8x1xf32>
    %77 = vector.broadcast %76 : vector<2x8x1xf32> to vector<2x8x8xf32>
    %78 = arith.subf %74, %77 : vector<2x8x8xf32>
    %79 = math.exp %78 : vector<2x8x8xf32>
    %cst_27 = arith.constant dense<0.000000e+00> : vector<2x8xf32>
    %80 = vector.multi_reduction <add>, %79, %cst_27 [2] : vector<2x8x8xf32> to vector<2x8xf32>
    %81 = vector.shape_cast %80 : vector<2x8xf32> to vector<2x8x1xf32>
    %82 = tpu.reciprocal %81 {approx = true} : vector<2x8x1xf32> -> vector<2x8x1xf32>
    %83 = vector.broadcast %82 : vector<2x8x1xf32> to vector<2x8x8xf32>
    %84 = arith.mulf %79, %83 : vector<2x8x8xf32>
    %85 = arith.truncf %84 : vector<2x8x8xf32> to vector<2x8x8xbf16>
    "tpu.trace_start"() <{level = 10 : i32, message = "bts,bsd->btd"}> : () -> ()
    %cst_28 = arith.constant dense<0.000000e+00> : vector<2x8x8xf32>
    %86 = tpu.matmul %85, %71, %cst_28 {dimension_numbers = #tpu.dot_dimension_numbers<[2], [1], [1], [2], [0, 0, 0, 1, 1, 2], [0], [0]>} : vector<2x8x8xbf16>, vector<2x8x8xbf16>, vector<2x8x8xf32> -> vector<2x8x8xf32>
    "tpu.trace_stop"() : () -> ()
    %87 = vector.shape_cast %86 : vector<2x8x8xf32> to vector<16x8xf32>
    %88 = vector.extract_strided_slice %37 {offsets = [0, 16], sizes = [16, 8], strides = [1, 1]} : vector<16x96xf32> to vector<16x8xf32>
    %89 = vector.shape_cast %88 : vector<16x8xf32> to vector<2x8x8xf32>
    %90 = arith.truncf %89 : vector<2x8x8xf32> to vector<2x8x8xbf16>
    %91 = vector.extract_strided_slice %37 {offsets = [0, 48], sizes = [16, 8], strides = [1, 1]} : vector<16x96xf32> to vector<16x8xf32>
    %92 = vector.shape_cast %91 : vector<16x8xf32> to vector<2x8x8xf32>
    %93 = arith.truncf %92 : vector<2x8x8xf32> to vector<2x8x8xbf16>
    %94 = vector.extract_strided_slice %37 {offsets = [0, 80], sizes = [16, 8], strides = [1, 1]} : vector<16x96xf32> to vector<16x8xf32>
    %95 = vector.shape_cast %94 : vector<16x8xf32> to vector<2x8x8xf32>
    %96 = arith.truncf %95 : vector<2x8x8xf32> to vector<2x8x8xbf16>
    "tpu.trace_start"() <{level = 10 : i32, message = "btd,bsd->bts"}> : () -> ()
    %cst_29 = arith.constant dense<0.000000e+00> : vector<2x8x8xf32>
    %97 = tpu.matmul %90, %93, %cst_29 {dimension_numbers = #tpu.dot_dimension_numbers<[2], [2], [1], [1], [0, 0, 0, 1, 1, 1], [0], [0]>} : vector<2x8x8xbf16>, vector<2x8x8xbf16>, vector<2x8x8xf32> -> vector<2x8x8xf32>
    "tpu.trace_stop"() : () -> ()
    %cst_30 = arith.constant 0.353553385 : f32
    %98 = vector.broadcast %cst_30 : f32 to vector<2x8x8xf32>
    %99 = arith.mulf %97, %98 : vector<2x8x8xf32>
    %cst_31 = arith.constant dense<0xFF800000> : vector<2x8xf32>
    %100 = vector.multi_reduction <maximumf>, %99, %cst_31 [2] : vector<2x8x8xf32> to vector<2x8xf32>
    %101 = vector.shape_cast %100 : vector<2x8xf32> to vector<2x8x1xf32>
    %102 = vector.broadcast %101 : vector<2x8x1xf32> to vector<2x8x8xf32>
    %103 = arith.subf %99, %102 : vector<2x8x8xf32>
    %104 = math.exp %103 : vector<2x8x8xf32>
    %cst_32 = arith.constant dense<0.000000e+00> : vector<2x8xf32>
    %105 = vector.multi_reduction <add>, %104, %cst_32 [2] : vector<2x8x8xf32> to vector<2x8xf32>
    %106 = vector.shape_cast %105 : vector<2x8xf32> to vector<2x8x1xf32>
    %107 = tpu.reciprocal %106 {approx = true} : vector<2x8x1xf32> -> vector<2x8x1xf32>
    %108 = vector.broadcast %107 : vector<2x8x1xf32> to vector<2x8x8xf32>
    %109 = arith.mulf %104, %108 : vector<2x8x8xf32>
    %110 = arith.truncf %109 : vector<2x8x8xf32> to vector<2x8x8xbf16>
    "tpu.trace_start"() <{level = 10 : i32, message = "bts,bsd->btd"}> : () -> ()
    %cst_33 = arith.constant dense<0.000000e+00> : vector<2x8x8xf32>
    %111 = tpu.matmul %110, %96, %cst_33 {dimension_numbers = #tpu.dot_dimension_numbers<[2], [1], [1], [2], [0, 0, 0, 1, 1, 2], [0], [0]>} : vector<2x8x8xbf16>, vector<2x8x8xbf16>, vector<2x8x8xf32> -> vector<2x8x8xf32>
    "tpu.trace_stop"() : () -> ()
    %112 = vector.shape_cast %111 : vector<2x8x8xf32> to vector<16x8xf32>
    %113 = vector.extract_strided_slice %37 {offsets = [0, 24], sizes = [16, 8], strides = [1, 1]} : vector<16x96xf32> to vector<16x8xf32>
    %114 = vector.shape_cast %113 : vector<16x8xf32> to vector<2x8x8xf32>
    %115 = arith.truncf %114 : vector<2x8x8xf32> to vector<2x8x8xbf16>
    %116 = vector.extract_strided_slice %37 {offsets = [0, 56], sizes = [16, 8], strides = [1, 1]} : vector<16x96xf32> to vector<16x8xf32>
    %117 = vector.shape_cast %116 : vector<16x8xf32> to vector<2x8x8xf32>
    %118 = arith.truncf %117 : vector<2x8x8xf32> to vector<2x8x8xbf16>
    %119 = vector.extract_strided_slice %37 {offsets = [0, 88], sizes = [16, 8], strides = [1, 1]} : vector<16x96xf32> to vector<16x8xf32>
    %120 = vector.shape_cast %119 : vector<16x8xf32> to vector<2x8x8xf32>
    %121 = arith.truncf %120 : vector<2x8x8xf32> to vector<2x8x8xbf16>
    "tpu.trace_start"() <{level = 10 : i32, message = "btd,bsd->bts"}> : () -> ()
    %cst_34 = arith.constant dense<0.000000e+00> : vector<2x8x8xf32>
    %122 = tpu.matmul %115, %118, %cst_34 {dimension_numbers = #tpu.dot_dimension_numbers<[2], [2], [1], [1], [0, 0, 0, 1, 1, 1], [0], [0]>} : vector<2x8x8xbf16>, vector<2x8x8xbf16>, vector<2x8x8xf32> -> vector<2x8x8xf32>
    "tpu.trace_stop"() : () -> ()
    %cst_35 = arith.constant 0.353553385 : f32
    %123 = vector.broadcast %cst_35 : f32 to vector<2x8x8xf32>
    %124 = arith.mulf %122, %123 : vector<2x8x8xf32>
    %cst_36 = arith.constant dense<0xFF800000> : vector<2x8xf32>
    %125 = vector.multi_reduction <maximumf>, %124, %cst_36 [2] : vector<2x8x8xf32> to vector<2x8xf32>
    %126 = vector.shape_cast %125 : vector<2x8xf32> to vector<2x8x1xf32>
    %127 = vector.broadcast %126 : vector<2x8x1xf32> to vector<2x8x8xf32>
    %128 = arith.subf %124, %127 : vector<2x8x8xf32>
    %129 = math.exp %128 : vector<2x8x8xf32>
    %cst_37 = arith.constant dense<0.000000e+00> : vector<2x8xf32>
    %130 = vector.multi_reduction <add>, %129, %cst_37 [2] : vector<2x8x8xf32> to vector<2x8xf32>
    %131 = vector.shape_cast %130 : vector<2x8xf32> to vector<2x8x1xf32>
    %132 = tpu.reciprocal %131 {approx = true} : vector<2x8x1xf32> -> vector<2x8x1xf32>
    %133 = vector.broadcast %132 : vector<2x8x1xf32> to vector<2x8x8xf32>
    %134 = arith.mulf %129, %133 : vector<2x8x8xf32>
    %135 = arith.truncf %134 : vector<2x8x8xf32> to vector<2x8x8xbf16>
    "tpu.trace_start"() <{level = 10 : i32, message = "bts,bsd->btd"}> : () -> ()
    %cst_38 = arith.constant dense<0.000000e+00> : vector<2x8x8xf32>
    %136 = tpu.matmul %135, %121, %cst_38 {dimension_numbers = #tpu.dot_dimension_numbers<[2], [1], [1], [2], [0, 0, 0, 1, 1, 2], [0], [0]>} : vector<2x8x8xbf16>, vector<2x8x8xbf16>, vector<2x8x8xf32> -> vector<2x8x8xf32>
    "tpu.trace_stop"() : () -> ()
    %137 = vector.shape_cast %136 : vector<2x8x8xf32> to vector<16x8xf32>
    %138 = tpu.concatenate %62, %87, %112, %137 in 1 : vector<16x8xf32>, vector<16x8xf32>, vector<16x8xf32>, vector<16x8xf32> -> vector<16x32xf32>
    %139 = arith.truncf %138 : vector<16x32xf32> to vector<16x32xbf16>
    %c0_39 = arith.constant 0 : index
    %c0_40 = arith.constant 0 : index
    %c0_41 = arith.constant 0 : index
    %140 = vector.load %arg7[%c0_39, %c0_40, %c0_41] : memref<1x32x32xbf16, #tpu.memory_space<vmem>>, vector<1x32x32xbf16>
    %141 = vector.shape_cast %140 : vector<1x32x32xbf16> to vector<32x32xbf16>
    %cst_42 = arith.constant dense<0.000000e+00> : vector<16x32xf32>
    %142 = tpu.matmul %139, %141, %cst_42 {dimension_numbers = #tpu.dot_dimension_numbers<[1], [0], [0], [1], [0, 0, 1, 1], [], []>} : vector<16x32xbf16>, vector<32x32xbf16>, vector<16x32xf32> -> vector<16x32xf32>
    %c0_43 = arith.constant 0 : index
    %c0_44 = arith.constant 0 : index
    %c0_45 = arith.constant 0 : index
    %143 = vector.load %arg8[%c0_43, %c0_44, %c0_45] : memref<1x1x32xf32, #tpu.memory_space<vmem>>, vector<1x1x32xf32>
    %144 = vector.shape_cast %143 : vector<1x1x32xf32> to vector<1x32xf32>
    %145 = vector.broadcast %144 : vector<1x32xf32> to vector<16x32xf32>
    %146 = arith.addf %142, %145 : vector<16x32xf32>
    %147 = arith.addf %3, %146 : vector<16x32xf32>
    %c0_46 = arith.constant 0 : index
    %c0_47 = arith.constant 0 : index
    %c0_48 = arith.constant 0 : index
    %148 = vector.load %arg9[%c0_46, %c0_47, %c0_48] : memref<1x1x32xf32, #tpu.memory_space<vmem>>, vector<1x1x32xf32>
    %149 = vector.shape_cast %148 : vector<1x1x32xf32> to vector<1x32xf32>
    %c0_49 = arith.constant 0 : index
    %c0_50 = arith.constant 0 : index
    %c0_51 = arith.constant 0 : index
    %150 = vector.load %arg10[%c0_49, %c0_50, %c0_51] : memref<1x1x32xf32, #tpu.memory_space<vmem>>, vector<1x1x32xf32>
    %151 = vector.shape_cast %150 : vector<1x1x32xf32> to vector<1x32xf32>
    %cst_52 = arith.constant dense<0.000000e+00> : vector<16xf32>
    %152 = vector.multi_reduction <add>, %147, %cst_52 [1] : vector<16x32xf32> to vector<16xf32>
    %153 = vector.shape_cast %152 : vector<16xf32> to vector<16x1xf32>
    %cst_53 = arith.constant 3.200000e+01 : f32
    %154 = vector.broadcast %cst_53 : f32 to vector<16x1xf32>
    %155 = arith.divf %153, %154 : vector<16x1xf32>
    %156 = vector.broadcast %155 : vector<16x1xf32> to vector<16x32xf32>
    %157 = arith.subf %147, %156 : vector<16x32xf32>
    %158 = arith.mulf %157, %157 : vector<16x32xf32>
    %cst_54 = arith.constant dense<0.000000e+00> : vector<16xf32>
    %159 = vector.multi_reduction <add>, %158, %cst_54 [1] : vector<16x32xf32> to vector<16xf32>
    %160 = vector.shape_cast %159 : vector<16xf32> to vector<16x1xf32>
    %cst_55 = arith.constant 3.200000e+01 : f32
    %161 = vector.broadcast %cst_55 : f32 to vector<16x1xf32>
    %162 = arith.divf %160, %161 : vector<16x1xf32>
    %163 = vector.broadcast %155 : vector<16x1xf32> to vector<16x32xf32>
    %164 = arith.subf %147, %163 : vector<16x32xf32>
    %cst_56 = arith.constant 9.99999974E-6 : f32
    %165 = vector.broadcast %cst_56 : f32 to vector<16x1xf32>
    %166 = arith.addf %162, %165 : vector<16x1xf32>
    %167 = math.rsqrt %166 : vector<16x1xf32>
    %168 = vector.broadcast %167 : vector<16x1xf32> to vector<16x32xf32>
    %169 = arith.mulf %164, %168 : vector<16x32xf32>
    %170 = vector.broadcast %149 : vector<1x32xf32> to vector<16x32xf32>
    %171 = arith.mulf %169, %170 : vector<16x32xf32>
    %172 = vector.broadcast %151 : vector<1x32xf32> to vector<16x32xf32>
    %173 = arith.addf %171, %172 : vector<16x32xf32>
    %174 = arith.truncf %173 : vector<16x32xf32> to vector<16x32xbf16>
    %c0_57 = arith.constant 0 : index
    %c0_58 = arith.constant 0 : index
    %c0_59 = arith.constant 0 : index
    %175 = vector.load %arg11[%c0_57, %c0_58, %c0_59] : memref<1x32x128xbf16, #tpu.memory_space<vmem>>, vector<1x32x128xbf16>
    %176 = vector.shape_cast %175 : vector<1x32x128xbf16> to vector<32x128xbf16>
    %cst_60 = arith.constant dense<0.000000e+00> : vector<16x128xf32>
    %177 = tpu.matmul %174, %176, %cst_60 {dimension_numbers = #tpu.dot_dimension_numbers<[1], [0], [0], [1], [0, 0, 1, 1], [], []>} : vector<16x32xbf16>, vector<32x128xbf16>, vector<16x128xf32> -> vector<16x128xf32>
    %c0_61 = arith.constant 0 : index
    %c0_62 = arith.constant 0 : index
    %c0_63 = arith.constant 0 : index
    %178 = vector.load %arg12[%c0_61, %c0_62, %c0_63] : memref<1x1x128xf32, #tpu.memory_space<vmem>>, vector<1x1x128xf32>
    %179 = vector.shape_cast %178 : vector<1x1x128xf32> to vector<1x128xf32>
    %180 = vector.broadcast %179 : vector<1x128xf32> to vector<16x128xf32>
    %181 = arith.addf %177, %180 : vector<16x128xf32>
    %cst_64 = arith.constant 5.000000e-01 : f32
    %182 = vector.broadcast %cst_64 : f32 to vector<16x128xf32>
    %183 = arith.mulf %182, %181 : vector<16x128xf32>
    %cst_65 = arith.constant 0.707106769 : f32
    %184 = vector.broadcast %cst_65 : f32 to vector<16x128xf32>
    %185 = arith.mulf %181, %184 : vector<16x128xf32>
    %186 = math.erf %185 : vector<16x128xf32>
    %cst_66 = arith.constant 1.000000e+00 : f32
    %187 = vector.broadcast %cst_66 : f32 to vector<16x128xf32>
    %188 = arith.addf %187, %186 : vector<16x128xf32>
    %189 = arith.mulf %183, %188 : vector<16x128xf32>
    %190 = arith.truncf %189 : vector<16x128xf32> to vector<16x128xbf16>
    %c0_67 = arith.constant 0 : index
    %c0_68 = arith.constant 0 : index
    %c0_69 = arith.constant 0 : index
    %191 = vector.load %arg13[%c0_67, %c0_68, %c0_69] : memref<1x128x32xbf16, #tpu.memory_space<vmem>>, vector<1x128x32xbf16>
    %192 = vector.shape_cast %191 : vector<1x128x32xbf16> to vector<128x32xbf16>
    %cst_70 = arith.constant dense<0.000000e+00> : vector<16x32xf32>
    %193 = tpu.matmul %190, %192, %cst_70 {dimension_numbers = #tpu.dot_dimension_numbers<[1], [0], [0], [1], [0, 0, 1, 1], [], []>} : vector<16x128xbf16>, vector<128x32xbf16>, vector<16x32xf32> -> vector<16x32xf32>
    %c0_71 = arith.constant 0 : index
    %c0_72 = arith.constant 0 : index
    %c0_73 = arith.constant 0 : index
    %194 = vector.load %arg14[%c0_71, %c0_72, %c0_73] : memref<1x1x32xf32, #tpu.memory_space<vmem>>, vector<1x1x32xf32>
    %195 = vector.shape_cast %194 : vector<1x1x32xf32> to vector<1x32xf32>
    %196 = vector.broadcast %195 : vector<1x32xf32> to vector<16x32xf32>
    %197 = arith.addf %193, %196 : vector<16x32xf32>
    %198 = arith.addf %147, %197 : vector<16x32xf32>
    %c1_i32 = arith.constant 1 : i32
    %199 = arith.cmpi slt, %arg1, %c1_i32 : i32
    %200 = arith.extui %199 : i1 to i32
    %c0_i32_74 = arith.constant 0 : i32
    %201 = arith.cmpi ne, %200, %c0_i32_74 : i32
    scf.if %201 {
      %c0_77 = arith.constant 0 : index
      %c0_78 = arith.constant 0 : index
      %205 = vector.load %arg17[%c0_77, %c0_78] : memref<16x32xf32, #tpu.memory_space<vmem>>, vector<16x32xf32>
      tpu.vector_store %arg17[%c0_77, %c0_78], %198 {strides = array<i32>} : memref<16x32xf32, #tpu.memory_space<vmem>>, vector<16x32xf32>,
    } else {
    }
    %c1_i32_75 = arith.constant 1 : i32
    %202 = arith.cmpi eq, %arg1, %c1_i32_75 : i32
    %203 = arith.extui %202 : i1 to i32
    %c0_i32_76 = arith.constant 0 : i32
    %204 = arith.cmpi ne, %203, %c0_i32_76 : i32
    scf.if %204 {
      %c0_77 = arith.constant 0 : index
      %c0_78 = arith.constant 0 : index
      %205 = vector.load %arg15[%c0_77, %c0_78] : memref<1x32xf32, #tpu.memory_space<vmem>>, vector<1x32xf32>
      %c0_79 = arith.constant 0 : index
      %c0_80 = arith.constant 0 : index
      %206 = vector.load %arg16[%c0_79, %c0_80] : memref<1x32xf32, #tpu.memory_space<vmem>>, vector<1x32xf32>
      %cst_81 = arith.constant dense<0.000000e+00> : vector<16xf32>
      %207 = vector.multi_reduction <add>, %198, %cst_81 [1] : vector<16x32xf32> to vector<16xf32>
      %208 = vector.shape_cast %207 : vector<16xf32> to vector<16x1xf32>
      %cst_82 = arith.constant 3.200000e+01 : f32
      %209 = vector.broadcast %cst_82 : f32 to vector<16x1xf32>
      %210 = arith.divf %208, %209 : vector<16x1xf32>
      %211 = vector.broadcast %210 : vector<16x1xf32> to vector<16x32xf32>
      %212 = arith.subf %198, %211 : vector<16x32xf32>
      %213 = arith.mulf %212, %212 : vector<16x32xf32>
      %cst_83 = arith.constant dense<0.000000e+00> : vector<16xf32>
      %214 = vector.multi_reduction <add>, %213, %cst_83 [1] : vector<16x32xf32> to vector<16xf32>
      %215 = vector.shape_cast %214 : vector<16xf32> to vector<16x1xf32>
      %cst_84 = arith.constant 3.200000e+01 : f32
      %216 = vector.broadcast %cst_84 : f32 to vector<16x1xf32>
      %217 = arith.divf %215, %216 : vector<16x1xf32>
      %218 = vector.broadcast %210 : vector<16x1xf32> to vector<16x32xf32>
      %219 = arith.subf %198, %218 : vector<16x32xf32>
      %cst_85 = arith.constant 9.99999974E-6 : f32
      %220 = vector.broadcast %cst_85 : f32 to vector<16x1xf32>
      %221 = arith.addf %217, %220 : vector<16x1xf32>
      %222 = math.rsqrt %221 : vector<16x1xf32>
      %223 = vector.broadcast %222 : vector<16x1xf32> to vector<16x32xf32>
      %224 = arith.mulf %219, %223 : vector<16x32xf32>
      %225 = vector.broadcast %205 : vector<1x32xf32> to vector<16x32xf32>
      %226 = arith.mulf %224, %225 : vector<16x32xf32>
      %227 = vector.broadcast %206 : vector<1x32xf32> to vector<16x32xf32>
      %228 = arith.addf %226, %227 : vector<16x32xf32>
      %c0_86 = arith.constant 0 : index
      %c0_87 = arith.constant 0 : index
      %229 = vector.load %arg17[%c0_86, %c0_87] : memref<16x32xf32, #tpu.memory_space<vmem>>, vector<16x32xf32>
      tpu.vector_store %arg17[%c0_86, %c0_87], %228 {strides = array<i32>} : memref<16x32xf32, #tpu.memory_space<vmem>>, vector<16x32xf32>,
    } else {
    }
    return
  }
  func.func @transform_0(%arg0: i32, %arg1: i32) -> (i32, i32) {
    %c0_i32 = arith.constant 0 : i32
    %c0_i32_0 = arith.constant 0 : i32
    return %arg0, %c0_i32 : i32, i32
  }
  func.func @transform_1(%arg0: i32, %arg1: i32) -> (i32, i32, i32) {
    %c0_i32 = arith.constant 0 : i32
    %c0_i32_0 = arith.constant 0 : i32
    %c0_i32_1 = arith.constant 0 : i32
    return %arg1, %c0_i32, %c0_i32_0 : i32, i32, i32
  }
  func.func @transform_2(%arg0: i32, %arg1: i32) -> (i32, i32, i32) {
    %c0_i32 = arith.constant 0 : i32
    %c0_i32_0 = arith.constant 0 : i32
    %c0_i32_1 = arith.constant 0 : i32
    return %arg1, %c0_i32, %c0_i32_0 : i32, i32, i32
  }
  func.func @transform_3(%arg0: i32, %arg1: i32) -> (i32, i32, i32) {
    %c0_i32 = arith.constant 0 : i32
    %c0_i32_0 = arith.constant 0 : i32
    %c0_i32_1 = arith.constant 0 : i32
    return %arg1, %c0_i32, %c0_i32_0 : i32, i32, i32
  }
  func.func @transform_4(%arg0: i32, %arg1: i32) -> (i32, i32, i32) {
    %c0_i32 = arith.constant 0 : i32
    %c0_i32_0 = arith.constant 0 : i32
    %c0_i32_1 = arith.constant 0 : i32
    return %arg1, %c0_i32, %c0_i32_0 : i32, i32, i32
  }
  func.func @transform_5(%arg0: i32, %arg1: i32) -> (i32, i32, i32) {
    %c0_i32 = arith.constant 0 : i32
    %c0_i32_0 = arith.constant 0 : i32
    %c0_i32_1 = arith.constant 0 : i32
    return %arg1, %c0_i32, %c0_i32_0 : i32, i32, i32
  }
  func.func @transform_6(%arg0: i32, %arg1: i32) -> (i32, i32, i32) {
    %c0_i32 = arith.constant 0 : i32
    %c0_i32_0 = arith.constant 0 : i32
    %c0_i32_1 = arith.constant 0 : i32
    return %arg1, %c0_i32, %c0_i32_0 : i32, i32, i32
  }
  func.func @transform_7(%arg0: i32, %arg1: i32) -> (i32, i32, i32) {
    %c0_i32 = arith.constant 0 : i32
    %c0_i32_0 = arith.constant 0 : i32
    %c0_i32_1 = arith.constant 0 : i32
    return %arg1, %c0_i32, %c0_i32_0 : i32, i32, i32
  }
  func.func @transform_8(%arg0: i32, %arg1: i32) -> (i32, i32, i32) {
    %c0_i32 = arith.constant 0 : i32
    %c0_i32_0 = arith.constant 0 : i32
    %c0_i32_1 = arith.constant 0 : i32
    return %arg1, %c0_i32, %c0_i32_0 : i32, i32, i32
  }
  func.func @transform_9(%arg0: i32, %arg1: i32) -> (i32, i32, i32) {
    %c0_i32 = arith.constant 0 : i32
    %c0_i32_0 = arith.constant 0 : i32
    %c0_i32_1 = arith.constant 0 : i32
    return %arg1, %c0_i32, %c0_i32_0 : i32, i32, i32
  }
  func.func @transform_10(%arg0: i32, %arg1: i32) -> (i32, i32, i32) {
    %c0_i32 = arith.constant 0 : i32
    %c0_i32_0 = arith.constant 0 : i32
    %c0_i32_1 = arith.constant 0 : i32
    return %arg1, %c0_i32, %c0_i32_0 : i32, i32, i32
  }
  func.func @transform_11(%arg0: i32, %arg1: i32) -> (i32, i32, i32) {
    %c0_i32 = arith.constant 0 : i32
    %c0_i32_0 = arith.constant 0 : i32
    %c0_i32_1 = arith.constant 0 : i32
    return %arg1, %c0_i32, %c0_i32_0 : i32, i32, i32
  }
  func.func @transform_12(%arg0: i32, %arg1: i32) -> (i32, i32, i32) {
    %c0_i32 = arith.constant 0 : i32
    %c0_i32_0 = arith.constant 0 : i32
    %c0_i32_1 = arith.constant 0 : i32
    return %arg1, %c0_i32, %c0_i32_0 : i32, i32, i32
  }
  func.func @transform_13(%arg0: i32, %arg1: i32) -> (i32, i32) {
    %c0_i32 = arith.constant 0 : i32
    %c0_i32_0 = arith.constant 0 : i32
    %c0_i32_1 = arith.constant 0 : i32
    return %c0_i32, %c0_i32_0 : i32, i32
  }
  func.func @transform_14(%arg0: i32, %arg1: i32) -> (i32, i32) {
    %c0_i32 = arith.constant 0 : i32
    %c0_i32_0 = arith.constant 0 : i32
    %c0_i32_1 = arith.constant 0 : i32
    return %c0_i32, %c0_i32_0 : i32, i32
  }
  func.func @transform_15(%arg0: i32, %arg1: i32) -> (i32, i32) {
    %c0_i32 = arith.constant 0 : i32
    %c0_i32_0 = arith.constant 0 : i32
    return %arg0, %c0_i32 : i32, i32
  }
}

</mosaic_0001>

<bundles_post_ra>
// kernel: gpt_forward.3
= control target key start
LH: loop header
LB: loop body
LE: loop exit
PB: predicated region body
PF: predicated region fallthrough
CT: control target
= control target key end

     0   :  { %v111_v0 = vmov 0.0   ;;  %vm112_vm0 = vmmov 0   ;;  %vm41_vm1 = vcmask 261120   ;;  %s154_s1 = inlined_call_operand.vmem [shape: bf16[32,128], index: 1, kind: input, shape index: {}]   ;;  %s155_s0 = inlined_call_operand.vmem [shape: f32[16,32], index: 0, kind: input, shape index: {}]   ;;  %s156_s2 = inlined_call_operand.vmem [shape: f32[1,128], index: 2, kind: input, shape index: {}]   ;;  %s157_s3 = inlined_call_operand.vmem [shape: f32[16,128], index: 3, kind: output, shape index: {}]  }
   0x1   :  { %99 = vmatprep.subr.bf16.mxu0 %v111_v0  ;;  %v109_v1 = vld [vmem:[%s154_s1] sm:$0xff]   ;;  %103 = vmatprep.mubr.msk.bf16.mxu0 %vm112_vm0, %v111_v0  ;;  %v110_v2 = vld [vmem:[%s154_s1 + $0x8] sm:$0xff]  }
   0x2   :  { %100 = vmatpush3.bf16.msra.mxu0 %v109_v1  ;;  %v15_v3 = vld [vmem:[%s155_s0] sm:$0xff]  ;;  %v16_v4 = vld [vmem:[%s155_s0 + $0x8] sm:$0xff] }
   0x3   :  { %101 = vmatprep.subr.bf16.mxu0 %v111_v0  ;;  %v17_v5 = vpack.c.bf16 %v16_v4, %v15_v3  ;;  %v92_v6 = vld [vmem:[%s156_s2] ss:$0 sm:$0xff] }
   0x6   :  { %102 = vmatpush3.bf16.msra.mxu0 %v110_v2 }
   0x9   :  { %104 = vmatmul.mubr.msk.bf16.vlgmr.msra.gmra.mrb[0].mxu0 %vm41_vm1, %v17_v5 }
  0xdc   :  { %v79_v7 = vpop.f32.mrb[0].mxu0 }
  0xdd   :  { %v80_v8 = vadd.f32 %v92_v6, %v79_v7  ;;  %v105_v9 = vpop.f32.mrb[1].mxu0 }
  0xde   :  { %v82_v10 = vpop.f32.mrb[2].mxu0 }
  0xdf   :  { %86 = vst [vmem:[%s157_s3] sm:$0xff] %v80_v8  ;;  %v83_v11 = vadd.f32 %v92_v6, %v82_v10  ;;  %v106_v12 = vpop.f32.mrb[3].mxu0 }
  0xe1   :  { %87 = vst [vmem:[%s157_s3 + $0x8] sm:$0xff] %v83_v11 }

// kernel: gpt_forward.2
= control target key start
LH: loop header
LB: loop body
LE: loop exit
PB: predicated region body
PF: predicated region fallthrough
CT: control target
= control target key end

     0   :  { %s2792_s18 = smov 0   ;;  %s2794_s19 = smov 0   ;;  %s3174_s0 = inlined_call_operand.vmem [shape: f32[16,32], index: 0, kind: input, shape index: {}, may-alias: {0,15}]   ;;  %s3175_s1 = inlined_call_operand.vmem [shape: f32[2,1,32], index: 1, kind: input, shape index: {}]   ;;  %s3176_s2 = inlined_call_operand.vmem [shape: f32[2,1,32], index: 2, kind: input, shape index: {}]   ;;  %s3177_s3 = inlined_call_operand.vmem [shape: bf16[2,32,96], index: 3, kind: input, shape index: {}]   ;;  %s3178_s4 = inlined_call_operand.vmem [shape: f32[2,1,96], index: 4, kind: input, shape index: {}]   ;;  %s3179_s5 = inlined_call_operand.vmem [shape: bf16[2,32,32], index: 5, kind: input, shape index: {}]   ;;  %s3180_s6 = inlined_call_operand.vmem [shape: f32[2,1,32], index: 6, kind: input, shape index: {}]   ;;  %s3181_s7 = inlined_call_operand.vmem [shape: f32[2,1,32], index: 7, kind: input, shape index: {}]   ;;  %s3182_s8 = inlined_call_operand.vmem [shape: f32[2,1,32], index: 8, kind: input, shape index: {}]   ;;  %s3183_s9 = inlined_call_operand.vmem [shape: bf16[2,32,128], index: 9, kind: input, shape index: {}]   ;;  %s3184_s10 = inlined_call_operand.vmem [shape: f32[2,1,128], index: 10, kind: input, shape index: {}]   ;;  %s3185_s11 = inlined_call_operand.vmem [shape: bf16[2,128,32], index: 11, kind: input, shape index: {}]   ;;  %s3186_s12 = inlined_call_operand.vmem [shape: f32[2,1,32], index: 12, kind: input, shape index: {}]   ;;  %s3187_s13 = inlined_call_operand.vmem [shape: f32[1,32], index: 13, kind: input, shape index: {}]   ;;  %s3188_s14 = inlined_call_operand.vmem [shape: f32[1,32], index: 14, kind: input, shape index: {}]   ;;  %s3189_s15 = inlined_call_operand.vmem [shape: f32[16,32], index: 15, kind: output, shape index: {}, may-alias: {0,15}]  }
   0x1   :  { %3193 = sst [smem:[#allocation6_spill]] %s3176_s2  ;;  %s2796_s20 = smov 0  }
   0x2   :  { %3194 = sst [smem:[#allocation7_spill]] %s3177_s3 }
   0x3   :  { %3195 = sst [smem:[#allocation8_spill]] %s3179_s5 }
   0x4   :  { %3196 = sst [smem:[#allocation9_spill]] %s3187_s13 }
   0x5   :  { %3197 = sst [smem:[#allocation10_spill]] %s3188_s14 }
   0x6 LB: > { %3198 = sst [smem:[#allocation2_spill]] %s2690_s19  ;;  %s34_s21 = sadd.s32 1, %s2690_s19  ;;  %s2694_s20 = sphi %s2796_s20, %s25_s20   ;;  %s2690_s19 = sphi %s2794_s19, %s3215_s19   ;;  %s2686_s18 = sphi %s2792_s18, %s3214_s18  }
   0x7   : > { %3199 = sst [smem:[#allocation3_spill]] %s2694_s20  ;;  %p2302_p0 = scmp.ge.s32.totalorder %s2694_s20, 1 }
   0x8   : > { %p35_p1 = scmp.ge.s32.totalorder %s34_s21, 2  ;;  %p554_p2 = scmp.lt.s32.totalorder %s2694_s20, 3 }
   0xa   : > { %s3217_s21 = smov (%p35_p1, %s34_s21), 0  ;;  %p555_p3 = pnand %p2302_p0, %p554_p2 }
   0xb   : > { %3200 = sst [smem:[#allocation4_spill]] %s3217_s21 }
   0xc   : > { %558 = sbr.rel (%p555_p3) target bundleno = 4487 (0x1187), region = 80 }
  0x13   : > { %p652_p4 = scmp.lt.s32.totalorder %s2686_s18, 1  ;;  %s3202_s3 = sld [smem:[#allocation7_spill]] }
  0x14   : > { %s3203_s5 = sld [smem:[#allocation8_spill]]  ;;  %p2311_p5 = scmp.ne.s32.totalorder %s2686_s18, 0 }
  0x15   : > { %s2814_s22 = scalar_select %p652_p4, %s2686_s18, 1 }
  0x16   : > { %706 = sbr.rel (%p2311_p5) target bundleno = 29 (0x1d), region = 84  ;;  %v707_v0 = vld [vmem:[%s3174_s0] sm:$0xff] (!%p2311_p5)  ;;  %vm709_vm0 = vcmask (!%p2311_p5), 261120   ;;  %v708_v1 = vld [vmem:[%s3174_s0 + $0x8] sm:$0xff] (!%p2311_p5) }
  0x17   : > { %s2361_s29 = sshll.u32 %s2814_s22, 4  ;;  %s676_s2 = scalar_lea.vmem %s3181_s7, %s2814_s22  ;;  %710 = vst.msk [vmem:[%s3189_s15] sm:$0xff] (!%p2311_p5), %vm709_vm0, %v707_v0  ;;  %711 = vst.msk [vmem:[%s3189_s15 + $0x8] sm:$0xff] (!%p2311_p5), %vm709_vm0, %v708_v1 }
  0x18   : > { %s679_s17 = scalar_lea.vmem %s3182_s8, %s2814_s22  ;;  %s695_s30 = scalar_lea.vmem %s3186_s12, %s2814_s22 }
  0x19   : > { %s2832_s21 = scalar_lea.vmem %s3202_s3, %s2361_s29  ;;  %s2854_s3 = scalar_lea.vmem %s3183_s9, %s2361_s29 }
  0x1a   : > { %s2837_s14 = scalar_lea.vmem %s3203_s5, %s2361_s29  ;;  %s687_s5 = scalar_lea.vmem %s3184_s10, %s2814_s22 }
  0x1b   : > { %3204 = sst [smem:[#allocation5_spill]] %s2837_s14  ;;  %s2364_s14 = sshll.u32 %s2814_s22, 6 }
  0x1c   : > { %s2864_s26 = scalar_lea.vmem %s3185_s11, %s2364_s14 }
  0x1d PF: > { %vm716_vm1 = vcmask 261120   ;;  %v2610_v16 = vld [vmem:[%s2832_s21] sm:$0xff]   ;;  %v2696_v17 = vmov 0.0   ;;  %v2611_v18 = vld [vmem:[%s2832_s21 + $0x8] sm:$0xff]   ;;  %vm2697_vm2 = vmmov 0   ;;  %s3205_s23 = scalar_lea.vmem %s3175_s1, %s2814_s22  ;;  %s3206_s20 = sld [smem:[#allocation6_spill]] }
  0x1e   : > { %v2886_v2 = vld [vmem:[%s3189_s15] sm:$0xff]  ;;  %v2891_v3 = vld [vmem:[%s3189_s15 + $0x8] sm:$0xff]  ;;  %2415 = vmatprep.subr.bf16.mxu0 %v2696_v17  ;;  %2435 = vmatprep.subr.bf16.mxu1 %v2696_v17  ;;  %s3208_s28 = scalar_lea.vmem %s3178_s4, %s2814_s22  ;;  %s2698_s27 = smov 96   ;;  %vm833_vm3 = vcmask 64512   ;;  %vm960_vm4 = vcmask 1043456   ;;  %vm1744_vm5 = vcmask 130048  }
  0x1f   : > { %v717_v4 = vsel %vm716_vm1, %v2886_v2, 0.0  ;;  %v720_v5 = vsel %vm716_vm1, %v2891_v3, 0.0  ;;  %2416 = vmatpush3.bf16.msra.mxu0 %v2610_v16  ;;  %2419 = vmatprep.mubr.msk.bf16.mxu0 %vm2697_vm2, %v2696_v17  ;;  %v2312_v27 = vld [vmem:[%s3205_s23] ss:$0 sm:$0xff]  ;;  %s2699_s16 = smov 64   ;;  %s2700_s21 = smov 88  }
  0x20   : > { %718 = vadd.xlane.f32.xlu0 %v717_v4  ;;  %2417 = vmatprep.subr.bf16.mxu0 %v2696_v17  ;;  %v2314_v36 = vld [vmem:[%s3208_s28] ss:$0 sm:$0xff]  ;;  %s2701_s29 = smov 120   ;;  %s2702_s23 = smov 56   ;;  %vm1747_vm6 = vcmask 195584  }
  0x21   : > { %2437 = vmatprep.mubr.msk.bf16.mxu1 %vm2697_vm2, %v2696_v17  ;;  %s2703_s24 = smov 80   ;;  %s2704_s19 = smov 112  }
  0x22   : > { %s2707_s13 = smov 104   ;;  %s2708_s25 = smov 40  }
  0x23   : > { %2418 = vmatpush3.bf16.msra.mxu0 %v2611_v18  ;;  %s3207_s14 = scalar_lea.vmem %s3206_s20, %s2814_s22  ;;  %s2705_s20 = smov 48  }
  0x24   : > { %721 = vadd.xlane.f32.xlu0 %v720_v5  ;;  %2423 = vmatprep.subr.bf16.mxu0 %v2696_v17  ;;  %v2313_v31 = vld [vmem:[%s3207_s14] ss:$0 sm:$0xff]  ;;  %s2706_s14 = smov 72   ;;  %s2709_s28 = smov 8  }
  0x25   : > { %p2353_p6 = scmp.ge.s32.totalorder %s2686_s18, 1 }
  0xad   : > { %v719_v6 = vpop.xlane.xlu0 %718 }
  0xae   : > { %v724_v7 = vmul.f32 0.03125, %v719_v6 }
  0xb0   : > { %v726_v8 = vsub.f32 %v2886_v2, %v724_v7 }
  0xb1   : > { %v722_v9 = vpop.xlane.xlu0 %721 }
  0xb2   : > { %v725_v10 = vmul.f32 0.03125, %v722_v9  ;;  %v728_v11 = vmul.f32 %v726_v8, %v726_v8 }
  0xb4   : > { %v727_v12 = vsub.f32 %v2891_v3, %v725_v10  ;;  %v730_v13 = vsel %vm716_vm1, %v728_v11, 0.0 }
  0xb5   : > { %731 = vadd.xlane.f32.xlu1 %v730_v13 }
  0xb6   : > { %v729_v14 = vmul.f32 %v727_v12, %v727_v12 }
  0xb8   : > { %v733_v15 = vsel %vm716_vm1, %v729_v14, 0.0 }
  0xb9   : > { %734 = vadd.xlane.f32.xlu1 %v733_v15 }
 0x142   : > { %v732_v19 = vpop.xlane.xlu1 %731 }
 0x143   : > { %v736_v20 = vmul.f32 0.03125, %v732_v19 }
 0x145   : > { %v738_v21 = vadd.f32 1e-05, %v736_v20 }
 0x146   : > { %v735_v22 = vpop.xlane.xlu1 %734 }
 0x147   : > { %2624 = vrsqrt.f32 %v738_v21  ;;  %v737_v23 = vmul.f32 0.03125, %v735_v22 }
 0x149   : > { %v739_v24 = vadd.f32 1e-05, %v737_v23 }
 0x14b   : > { %2626 = vrsqrt.f32 %v739_v24 }
 0x151   : > { %v2625_v25 = vpop.eup %2624 }
 0x152   : > { %v742_v26 = vmul.f32 %v2625_v25, %v726_v8 }
 0x154   : > { %v750_v30 = vmul.f32 %v2312_v27, %v742_v26 }
 0x155   : > { %v2627_v28 = vpop.eup %2626 }
 0x156   : > { %v743_v29 = vmul.f32 %v2627_v28, %v727_v12  ;;  %v758_v33 = vadd.f32 %v2313_v31, %v750_v30 }
 0x158   : > { %v751_v32 = vmul.f32 %v2312_v27, %v743_v29 }
 0x15a   : > { %v759_v34 = vadd.f32 %v2313_v31, %v751_v32 }
 0x15c   : > { %v760_v35 = vpack.c.bf16 %v759_v34, %v758_v33 }
 0x15e   : > { %2420 = vmatmul.mubr.msk.bf16.vlgmr.msra.gmra.mrb[0].mxu0 %vm716_vm1, %v760_v35 }
 0x15f   : > { %2425 = vmatprep.mubr.msk.bf16.mxu0 %vm2697_vm2, %v2696_v17 }
 0x231   : > { %v821_v37 = vpop.f32.mrb[0].mxu0 }
 0x232   : > { %v822_v38 = vadd.f32 %v2314_v36, %v821_v37  ;;  %v2421_v39 = vpop.f32.mrb[1].mxu0 }
 0x233   : > { %v824_v40 = vpop.f32.mrb[2].mxu0 }
 0x234   : > { %v2929_v41 = vpack.c.bf16 %v822_v38, %v822_v38  ;;  %v825_v42 = vadd.f32 %v2314_v36, %v824_v40  ;;  %v2422_v43 = vpop.f32.mrb[3].mxu0 }
 0x236   : > { %v2931_v44 = vpack.c.bf16 %v825_v42, %v825_v42  ;;  %831 = vrot.lane.b32.xlu0 %v2929_v41, %s2698_s27 }
 0x238   : > { %881 = vrot.lane.b32.xlu1 %v2931_v44, %s2698_s27  ;;  %s2710_s27 = smov 16  }
 0x2a8   : > { %v832_v45 = vpop.permute.xlu0 %831 }
 0x2a9   : > { %v838_v46 = vsel %vm833_vm3, %v832_v45, 0 }
 0x2aa   : > { %2424 = vmatpush3.bf16.xpose.msra.mxu0 %v838_v46  ;;  %v882_v47 = vpop.permute.xlu1 %881 }
 0x2ab   : > { %2429 = vmatprep.subr.bf16.mxu0 %v2696_v17  ;;  %v887_v48 = vsel %vm833_vm3, %v882_v47, 0 }
 0x2b1   : > { %2426 = vmatmul.mubr.msk.bf16.vlgmr.msra.gmra.mrb[4].mxu0 %vm833_vm3, %v2929_v41 }
 0x2b2   : > { %2430 = vmatpush3.bf16.xpose.msra.mxu0 %v887_v48  ;;  %2431 = vmatprep.mubr.msk.bf16.mxu0 %vm2697_vm2, %v2696_v17 }
 0x2b3   : > { %2441 = vmatprep.subr.bf16.mxu0 %v2696_v17 }
 0x2b9   : > { %2432 = vmatmul.mubr.msk.bf16.vlgmr.msra.gmra.mrb[8].mxu0 %vm833_vm3, %v2931_v44 }
 0x2ba   : > { %2443 = vmatprep.mubr.msk.bf16.mxu0 %vm2697_vm2, %v2696_v17 }
 0x384   : > { %v874_v49 = vpop.f32.mrb[4].mxu0 }
 0x385   : > { %v929_v50 = vmul.f32 0.35355338, %v874_v49  ;;  %v2427_v51 = vpop.f32.mrb[5].mxu0 }
 0x386   : > { %v877_v52 = vpop.f32.mrb[6].mxu0 }
 0x387   : > { %v2428_v53 = vpop.f32.mrb[7].mxu0  ;;  %v931_v54 = vsel %vm833_vm3, %v929_v50, -inf }
 0x388   : > { %932 = vmax.xlane.f32.xlu1 %v931_v54 }
 0x38c   : > { %v923_v55 = vpop.f32.mrb[8].mxu0 }
 0x38d   : > { %v930_v56 = vmul.f32 0.35355338, %v923_v55  ;;  %v2433_v57 = vpop.f32.mrb[9].mxu0 }
 0x38e   : > { %v926_v58 = vpop.f32.mrb[10].mxu0 }
 0x38f   : > { %v2434_v59 = vpop.f32.mrb[11].mxu0  ;;  %v934_v60 = vsel %vm833_vm3, %v930_v56, -inf }
 0x390   : > { %935 = vmax.xlane.f32.xlu0 %v934_v60 }
 0x399   : > { %1004 = vrot.lane.b32.xlu1 %v2931_v44, %s2699_s16 }
 0x39d   : > { %1054 = vrot.lane.b32.xlu1 %v2929_v41, %s2700_s21 }
 0x415   : > { %v933_v61 = vpop.xlane.xlu1 %932 }
 0x416   : > { %v937_v62 = vsub.f32 %v929_v50, %v933_v61 }
 0x418   : > { %v939_v63 = vmul.f32 1.442695, %v937_v62 }
 0x419   : > { %v1005_v0 = vpop.permute.xlu1 %1004 }
 0x41a   : > { %2628 = vpow2.f32 %v939_v63  ;;  %v1010_v1 = vsel %vm960_vm4, %v1005_v0, 0 }
 0x41b   : > { %2442 = vmatpush3.bf16.msra.mxu0 %v1010_v1 }
 0x41c   : > { %2453 = vmatprep.subr.bf16.mxu0 %v2696_v17 }
 0x41d   : > { %v936_v4 = vpop.xlane.xlu0 %935  ;;  %v1055_v12 = vpop.permute.xlu1 %1054 }
 0x41e   : > { %v938_v5 = vsub.f32 %v930_v56, %v936_v4  ;;  %v1060_v20 = vsel %vm833_vm3, %v1055_v12, 0 }
 0x420   : > { %v941_v6 = vmul.f32 1.442695, %v938_v5 }
 0x422   : > { %2630 = vpow2.f32 %v941_v6 }
 0x424   : > { %v2629_v7 = vpop.eup %2628 }
 0x425   : > { %v943_v8 = vsel %vm833_vm3, %v2629_v7, 0.0 }
 0x426   : > { %944 = vadd.xlane.f32.xlu0 %v943_v8 }
 0x42c   : > { %v2631_v9 = vpop.eup %2630 }
 0x42d   : > { %v946_v10 = vsel %vm833_vm3, %v2631_v9, 0.0 }
 0x42e   : > { %947 = vadd.xlane.f32.xlu1 %v946_v10 }
 0x43c   : > { %955 = vrot.lane.b32.xlu0 %v2929_v41, %s2699_s16  ;;  %s3209_s16 = sld [smem:[#allocation5_spill]] }
 0x43f   : > { %1104 = vrot.lane.b32.xlu1 %v2931_v44, %s2700_s21  ;;  %s2711_s21 = smov 24  }
 0x440   : > { %1052 = vrot.lane.b32.xlu0 %v2929_v41, %s2701_s29 }
 0x443   : > { %1102 = vrot.lane.b32.xlu1 %v2931_v44, %s2701_s29 }
 0x4b3   : > { %v945_v11 = vpop.xlane.xlu0 %944 }
 0x4b4   : > { %2632 = vrcp.f32 %v945_v11 }
 0x4b7   : > { %v956_v13 = vpop.permute.xlu0 %955 }
 0x4b8   : > { %v962_v14 = vsel %vm960_vm4, %v956_v13, 0 }
 0x4b9   : > { %2436 = vmatpush3.bf16.msra.mxu1 %v962_v14 }
 0x4ba   : > { %2447 = vmatprep.subr.bf16.mxu1 %v2696_v17 }
 0x4bb   : > { %v948_v15 = vpop.xlane.xlu1 %947  ;;  %v1053_v25 = vpop.permute.xlu0 %1052 }
 0x4bc   : > { %2634 = vrcp.f32 %v948_v15 }
 0x4be   : > { %v2633_v16 = vpop.eup %2632 }
 0x4bf   : > { %v951_v18 = vmul.f32 %v2633_v16, %v2629_v7  ;;  %v1105_v23 = vpop.permute.xlu1 %1104 }
 0x4c0   : > { %v1110_v26 = vsel %vm833_vm3, %v1105_v23, 0 }
 0x4c1   : > { %v953_v19 = vpack.c.bf16 %v951_v18, %v951_v18 }
 0x4c3   : > { %2438 = vmatmul.mubr.msk.bf16.vlgmr.msra.gmra.mrb[0].mxu1 %vm833_vm3, %v953_v19  ;;  %v1103_v27 = vpop.permute.xlu1 %1102 }
 0x4c4   : > { %2448 = vmatpush3.bf16.xpose.msra.mxu1 %v1060_v20  ;;  %2449 = vmatprep.mubr.msk.bf16.mxu1 %vm2697_vm2, %v2696_v17 }
 0x4c5   : > { %2459 = vmatprep.subr.bf16.mxu1 %v2696_v17 }
 0x4c6   : > { %v2635_v21 = vpop.eup %2634 }
 0x4c7   : > { %v952_v22 = vmul.f32 %v2635_v21, %v2631_v9 }
 0x4c9   : > { %v954_v24 = vpack.c.bf16 %v952_v22, %v952_v22 }
 0x4cb   : > { %2444 = vmatmul.mubr.msk.bf16.vlgmr.msra.gmra.mrb[12].mxu0 %vm833_vm3, %v954_v24  ;;  %2450 = vmatmul.mubr.msk.bf16.vlgmr.msra.gmra.mrb[4].mxu1 %vm833_vm3, %v1053_v25 }
 0x4cc   : > { %2454 = vmatpush3.bf16.xpose.msra.mxu0 %v1110_v26  ;;  %2455 = vmatprep.mubr.msk.bf16.mxu0 %vm2697_vm2, %v2696_v17 }
 0x4cd   : > { %2465 = vmatprep.subr.bf16.mxu0 %v2696_v17  ;;  %2461 = vmatprep.mubr.msk.bf16.mxu1 %vm2697_vm2, %v2696_v17 }
 0x4d3   : > { %2456 = vmatmul.mubr.msk.bf16.vlgmr.msra.gmra.mrb[16].mxu0 %vm833_vm3, %v1103_v27 }
 0x4d4   : > { %2467 = vmatprep.mubr.msk.bf16.mxu0 %vm2697_vm2, %v2696_v17 }
 0x596   : > { %v2977_v28 = vpop.f32.mrb[0].mxu1 }
 0x597   : > { %v2439_v29 = vpop.f32.mrb[1].mxu1 }
 0x598   : > { %v1001_v30 = vpop.f32.mrb[2].mxu1 }
 0x599   : > { %v2440_v31 = vpop.f32.mrb[3].mxu1 }
 0x59e   : > { %v2979_v32 = vpop.f32.mrb[12].mxu0  ;;  %v1096_v33 = vpop.f32.mrb[4].mxu1 }
 0x59f   : > { %v1152_v34 = vmul.f32 0.35355338, %v1096_v33  ;;  %v2445_v35 = vpop.f32.mrb[13].mxu0  ;;  %v2451_v36 = vpop.f32.mrb[5].mxu1 }
 0x5a0   : > { %v1049_v37 = vpop.f32.mrb[14].mxu0  ;;  %v1099_v38 = vpop.f32.mrb[6].mxu1 }
 0x5a1   : > { %v2446_v39 = vpop.f32.mrb[15].mxu0  ;;  %v2452_v40 = vpop.f32.mrb[7].mxu1  ;;  %v1154_v42 = vsel %vm833_vm3, %v1152_v34, -inf }
 0x5a2   : > { %1155 = vmax.xlane.f32.xlu0 %v1154_v42 }
 0x5a6   : > { %v1146_v43 = vpop.f32.mrb[16].mxu0 }
 0x5a7   : > { %v1153_v45 = vmul.f32 0.35355338, %v1146_v43  ;;  %v2457_v46 = vpop.f32.mrb[17].mxu0 }
 0x5a8   : > { %v1149_v47 = vpop.f32.mrb[18].mxu0 }
 0x5a9   : > { %v2458_v48 = vpop.f32.mrb[19].mxu0  ;;  %v1157_v49 = vsel %vm833_vm3, %v1153_v45, -inf }
 0x5aa   : > { %1158 = vmax.xlane.f32.xlu1 %v1157_v49 }
 0x5bb   : > { %1226 = vrot.lane.b32.xlu1 %v2931_v44, %s2702_s23 }
 0x5bf   : > { %1276 = vrot.lane.b32.xlu1 %v2929_v41, %s2703_s24 }
 0x5c3   : > { %1326 = vrot.lane.b32.xlu1 %v2931_v44, %s2703_s24  ;;  %s3210_s24 = scalar_lea.vmem %s3180_s6, %s2814_s22 }
 0x5c7   : > { %1324 = vrot.lane.b32.xlu1 %v2931_v44, %s2704_s19 }
 0x62f   : > { %v1156_v50 = vpop.xlane.xlu0 %1155 }
 0x630   : > { %v1160_v51 = vsub.f32 %v1152_v34, %v1156_v50 }
 0x632   : > { %v1162_v52 = vmul.f32 1.442695, %v1160_v51 }
 0x634   : > { %2636 = vpow2.f32 %v1162_v52 }
 0x637   : > { %v1159_v53 = vpop.xlane.xlu1 %1158 }
 0x638   : > { %v1161_v54 = vsub.f32 %v1153_v45, %v1159_v53 }
 0x63a   : > { %v1164_v55 = vmul.f32 1.442695, %v1161_v54 }
 0x63b   : > { %v1227_v56 = vpop.permute.xlu1 %1226 }
 0x63c   : > { %2638 = vpow2.f32 %v1164_v55  ;;  %v1232_v57 = vsel %vm960_vm4, %v1227_v56, 0 }
 0x63d   : > { %2466 = vmatpush3.bf16.msra.mxu0 %v1232_v57 }
 0x63e   : > { %v2637_v58 = vpop.eup %2636  ;;  %2477 = vmatprep.subr.bf16.mxu0 %v2696_v17 }
 0x63f   : > { %v1166_v59 = vsel %vm833_vm3, %v2637_v58, 0.0  ;;  %v1277_v7 = vpop.permute.xlu1 %1276 }
 0x640   : > { %1167 = vadd.xlane.f32.xlu0 %v1166_v59  ;;  %v1282_v11 = vsel %vm833_vm3, %v1277_v7, 0 }
 0x643   : > { %v1327_v10 = vpop.permute.xlu1 %1326 }
 0x644   : > { %v1332_v13 = vsel %vm833_vm3, %v1327_v10, 0 }
 0x646   : > { %v2639_v60 = vpop.eup %2638 }
 0x647   : > { %v1169_v61 = vsel %vm833_vm3, %v2639_v60, 0.0  ;;  %v1325_v15 = vpop.permute.xlu1 %1324 }
 0x648   : > { %1170 = vadd.xlane.f32.xlu0 %v1169_v61 }
 0x65e   : > { %1178 = vrot.lane.b32.xlu0 %v2929_v41, %s2702_s23 }
 0x662   : > { %1274 = vrot.lane.b32.xlu0 %v2929_v41, %s2704_s19 }
 0x6cd   : > { %v1168_v62 = vpop.xlane.xlu0 %1167 }
 0x6ce   : > { %2640 = vrcp.f32 %v1168_v62 }
 0x6d5   : > { %v1171_v63 = vpop.xlane.xlu0 %1170 }
 0x6d6   : > { %2642 = vrcp.f32 %v1171_v63 }
 0x6d8   : > { %v2641_v0 = vpop.eup %2640 }
 0x6d9   : > { %v1174_v1 = vmul.f32 %v2641_v0, %v2637_v58  ;;  %v1179_v4 = vpop.permute.xlu0 %1178 }
 0x6da   : > { %v1184_v5 = vsel %vm960_vm4, %v1179_v4, 0 }
 0x6db   : > { %2460 = vmatpush3.bf16.msra.mxu1 %v1184_v5  ;;  %v1176_v6 = vpack.c.bf16 %v1174_v1, %v1174_v1 }
 0x6dc   : > { %2471 = vmatprep.subr.bf16.mxu1 %v2696_v17 }
 0x6dd   : > { %v1275_v14 = vpop.permute.xlu0 %1274 }
 0x6de   : > { %2462 = vmatmul.mubr.msk.bf16.vlgmr.msra.gmra.mrb[8].mxu1 %vm833_vm3, %v1176_v6 }
 0x6df   : > { %2473 = vmatprep.mubr.msk.bf16.mxu1 %vm2697_vm2, %v2696_v17 }
 0x6e0   : > { %v2643_v8 = vpop.eup %2642 }
 0x6e1   : > { %v1175_v9 = vmul.f32 %v2643_v8, %v2639_v60 }
 0x6e3   : > { %v1177_v12 = vpack.c.bf16 %v1175_v9, %v1175_v9 }
 0x6e4   : > { %2472 = vmatpush3.bf16.xpose.msra.mxu1 %v1282_v11 }
 0x6e5   : > { %2468 = vmatmul.mubr.msk.bf16.vlgmr.msra.gmra.mrb[20].mxu0 %vm833_vm3, %v1177_v12  ;;  %2483 = vmatprep.subr.bf16.mxu1 %v2696_v17 }
 0x6e6   : > { %2478 = vmatpush3.bf16.xpose.msra.mxu0 %v1332_v13  ;;  %2479 = vmatprep.mubr.msk.bf16.mxu0 %vm2697_vm2, %v2696_v17 }
 0x6e7   : > { %2489 = vmatprep.subr.bf16.mxu0 %v2696_v17 }
 0x6eb   : > { %2474 = vmatmul.mubr.msk.bf16.vlgmr.msra.gmra.mrb[12].mxu1 %vm833_vm3, %v1275_v14 }
 0x6ec   : > { %2485 = vmatprep.mubr.msk.bf16.mxu1 %vm2697_vm2, %v2696_v17 }
 0x6ed   : > { %2480 = vmatmul.mubr.msk.bf16.vlgmr.msra.gmra.mrb[24].mxu0 %vm833_vm3, %v1325_v15 }
 0x6ee   : > { %2491 = vmatprep.mubr.msk.bf16.mxu0 %vm2697_vm2, %v2696_v17 }
 0x7b1   : > { %v3011_v16 = vpop.f32.mrb[8].mxu1 }
 0x7b2   : > { %v2463_v18 = vpop.f32.mrb[9].mxu1 }
 0x7b3   : > { %v1223_v19 = vpop.f32.mrb[10].mxu1 }
 0x7b4   : > { %v2464_v20 = vpop.f32.mrb[11].mxu1 }
 0x7b8   : > { %v3013_v21 = vpop.f32.mrb[20].mxu0 }
 0x7b9   : > { %v2595_v22 = vpack.i.bf16 %v3013_v21, %v3011_v16  ;;  %v2469_v23 = vpop.f32.mrb[21].mxu0 }
 0x7ba   : > { %v1271_v24 = vpop.f32.mrb[22].mxu0 }
 0x7bb   : > { %v2470_v25 = vpop.f32.mrb[23].mxu0 }
 0x7be   : > { %v1318_v26 = vpop.f32.mrb[12].mxu1 }
 0x7bf   : > { %v1374_v27 = vmul.f32 0.35355338, %v1318_v26  ;;  %v2475_v29 = vpop.f32.mrb[13].mxu1 }
 0x7c0   : > { %v1321_v30 = vpop.f32.mrb[14].mxu1  ;;  %v1368_v31 = vpop.f32.mrb[24].mxu0 }
 0x7c1   : > { %v1375_v33 = vmul.f32 0.35355338, %v1368_v31  ;;  %v2476_v34 = vpop.f32.mrb[15].mxu1  ;;  %v2481_v35 = vpop.f32.mrb[25].mxu0  ;;  %v1376_v36 = vsel %vm833_vm3, %v1374_v27, -inf }
 0x7c2   : > { %1377 = vmax.xlane.f32.xlu0 %v1376_v36  ;;  %v1371_v37 = vpop.f32.mrb[26].mxu0 }
 0x7c3   : > { %v2482_v38 = vpop.f32.mrb[27].mxu0  ;;  %v1379_v39 = vsel %vm833_vm3, %v1375_v33, -inf }
 0x7c4   : > { %1380 = vmax.xlane.f32.xlu1 %v1379_v39 }
 0x7d5   : > { %1448 = vrot.lane.b32.xlu1 %v2931_v44, %s2705_s20 }
 0x7d9   : > { %1498 = vrot.lane.b32.xlu1 %v2929_v41, %s2706_s14 }
 0x7dd   : > { %1548 = vrot.lane.b32.xlu1 %v2931_v44, %s2706_s14 }
 0x7e1   : > { %1546 = vrot.lane.b32.xlu1 %v2931_v44, %s2707_s13 }
 0x84f   : > { %v1378_v40 = vpop.xlane.xlu0 %1377 }
 0x850   : > { %v1382_v42 = vsub.f32 %v1374_v27, %v1378_v40 }
 0x851   : > { %v1381_v43 = vpop.xlane.xlu1 %1380 }
 0x852   : > { %v1384_v45 = vmul.f32 1.442695, %v1382_v42  ;;  %v1383_v46 = vsub.f32 %v1375_v33, %v1381_v43 }
 0x854   : > { %2644 = vpow2.f32 %v1384_v45  ;;  %v1386_v47 = vmul.f32 1.442695, %v1383_v46 }
 0x855   : > { %v1449_v48 = vpop.permute.xlu1 %1448 }
 0x856   : > { %2646 = vpow2.f32 %v1386_v47  ;;  %v1454_v49 = vsel %vm960_vm4, %v1449_v48, 0 }
 0x857   : > { %2490 = vmatpush3.bf16.msra.mxu0 %v1454_v49 }
 0x858   : > { %2501 = vmatprep.subr.bf16.mxu0 %v2696_v17 }
 0x859   : > { %v1499_v59 = vpop.permute.xlu1 %1498 }
 0x85a   : > { %v1504_v1 = vsel %vm833_vm3, %v1499_v59, 0 }
 0x85d   : > { %v1549_v0 = vpop.permute.xlu1 %1548 }
 0x85e   : > { %v2645_v50 = vpop.eup %2644  ;;  %v1554_v5 = vsel %vm833_vm3, %v1549_v0, 0 }
 0x85f   : > { %v1388_v51 = vsel %vm833_vm3, %v2645_v50, 0.0 }
 0x860   : > { %v2647_v52 = vpop.eup %2646  ;;  %1389 = vadd.xlane.f32.xlu0 %v1388_v51 }
 0x861   : > { %v1391_v53 = vsel %vm833_vm3, %v2647_v52, 0.0  ;;  %v1547_v7 = vpop.permute.xlu1 %1546 }
 0x864   : > { %1392 = vadd.xlane.f32.xlu0 %v1391_v53 }
 0x87a   : > { %1400 = vrot.lane.b32.xlu0 %v2929_v41, %s2705_s20 }
 0x87e   : > { %1496 = vrot.lane.b32.xlu0 %v2929_v41, %s2707_s13 }
 0x8ed   : > { %v1390_v54 = vpop.xlane.xlu0 %1389 }
 0x8ee   : > { %2648 = vrcp.f32 %v1390_v54  ;;  %v2612_v54 = vld [vmem:[%s3209_s16] sm:$0xff]  }
 0x8f1   : > { %v1393_v55 = vpop.xlane.xlu0 %1392 }
 0x8f2   : > { %2650 = vrcp.f32 %v1393_v55  ;;  %v2613_v55 = vld [vmem:[%s3209_s16 + $0x8] sm:$0xff]  }
 0x8f5   : > { %v1401_v56 = vpop.permute.xlu0 %1400 }
 0x8f6   : > { %v1406_v57 = vsel %vm960_vm4, %v1401_v56, 0 }
 0x8f7   : > { %2484 = vmatpush3.bf16.msra.mxu1 %v1406_v57 }
 0x8f8   : > { %v2649_v58 = vpop.eup %2648  ;;  %2495 = vmatprep.subr.bf16.mxu1 %v2696_v17 }
 0x8f9   : > { %v1396_v60 = vmul.f32 %v2649_v58, %v2645_v50  ;;  %v1497_v6 = vpop.permute.xlu0 %1496 }
 0x8fb   : > { %v1398_v61 = vpack.c.bf16 %v1396_v60, %v1396_v60 }
 0x8fc   : > { %v2651_v62 = vpop.eup %2650 }
 0x8fd   : > { %v1397_v63 = vmul.f32 %v2651_v62, %v2647_v52  ;;  %2486 = vmatmul.mubr.msk.bf16.vlgmr.msra.gmra.mrb[16].mxu1 %vm833_vm3, %v1398_v61 }
 0x8fe   : > { %2497 = vmatprep.mubr.msk.bf16.mxu1 %vm2697_vm2, %v2696_v17 }
 0x8ff   : > { %v1399_v4 = vpack.c.bf16 %v1397_v63, %v1397_v63 }
 0x900   : > { %2496 = vmatpush3.bf16.xpose.msra.mxu1 %v1504_v1 }
 0x901   : > { %2492 = vmatmul.mubr.msk.bf16.vlgmr.msra.gmra.mrb[28].mxu0 %vm833_vm3, %v1399_v4  ;;  %2507 = vmatprep.subr.bf16.mxu1 %v2696_v17 }
 0x902   : > { %2502 = vmatpush3.bf16.xpose.msra.mxu0 %v1554_v5  ;;  %2503 = vmatprep.mubr.msk.bf16.mxu0 %vm2697_vm2, %v2696_v17 }
 0x903   : > { %2513 = vmatprep.subr.bf16.mxu0 %v2696_v17 }
 0x907   : > { %2498 = vmatmul.mubr.msk.bf16.vlgmr.msra.gmra.mrb[20].mxu1 %vm833_vm3, %v1497_v6 }
 0x908   : > { %2509 = vmatprep.mubr.msk.bf16.mxu1 %vm2697_vm2, %v2696_v17 }
 0x909   : > { %2504 = vmatmul.mubr.msk.bf16.vlgmr.msra.gmra.mrb[32].mxu0 %vm833_vm3, %v1547_v7 }
 0x90a   : > { %2515 = vmatprep.mubr.msk.bf16.mxu0 %vm2697_vm2, %v2696_v17 }
 0x9d0   : > { %v1442_v8 = vpop.f32.mrb[16].mxu1 }
 0x9d1   : > { %v2487_v9 = vpop.f32.mrb[17].mxu1 }
 0x9d2   : > { %v1445_v10 = vpop.f32.mrb[18].mxu1 }
 0x9d3   : > { %v2488_v11 = vpop.f32.mrb[19].mxu1 }
 0x9d4   : > { %v1490_v12 = vpop.f32.mrb[28].mxu0 }
 0x9d5   : > { %v2600_v13 = vpack.i.bf16 %v1490_v12, %v1442_v8  ;;  %v2493_v14 = vpop.f32.mrb[29].mxu0 }
 0x9d6   : > { %v1493_v15 = vpop.f32.mrb[30].mxu0 }
 0x9d7   : > { %v2494_v18 = vpop.f32.mrb[31].mxu0 }
 0x9da   : > { %v1540_v19 = vpop.f32.mrb[20].mxu1 }
 0x9db   : > { %v1596_v20 = vmul.f32 0.35355338, %v1540_v19  ;;  %v2499_v23 = vpop.f32.mrb[21].mxu1 }
 0x9dc   : > { %v1543_v24 = vpop.f32.mrb[22].mxu1  ;;  %v1590_v25 = vpop.f32.mrb[32].mxu0 }
 0x9dd   : > { %v1597_v26 = vmul.f32 0.35355338, %v1590_v25  ;;  %v2500_v27 = vpop.f32.mrb[23].mxu1  ;;  %v2505_v29 = vpop.f32.mrb[33].mxu0  ;;  %v1598_v30 = vsel %vm833_vm3, %v1596_v20, -inf }
 0x9de   : > { %1599 = vmax.xlane.f32.xlu0 %v1598_v30  ;;  %v1593_v31 = vpop.f32.mrb[34].mxu0 }
 0x9df   : > { %v2506_v33 = vpop.f32.mrb[35].mxu0  ;;  %v1601_v34 = vsel %vm833_vm3, %v1597_v26, -inf }
 0x9e0   : > { %1602 = vmax.xlane.f32.xlu1 %v1601_v34 }
 0x9f1   : > { %1670 = vrot.lane.b32.xlu1 %v2931_v44, %s2708_s25 }
 0x9f5   : > { %2596 = vrot.lane.b32.xlu1 %v2595_v22, %s2709_s28 }
 0x9f9   : > { %2601 = vrot.lane.b32.xlu1 %v2600_v13, %s2710_s27 }
 0xa6b   : > { %v1600_v35 = vpop.xlane.xlu0 %1599 }
 0xa6c   : > { %v1604_v36 = vsub.f32 %v1596_v20, %v1600_v35 }
 0xa6d   : > { %v1603_v37 = vpop.xlane.xlu1 %1602 }
 0xa6e   : > { %v1606_v38 = vmul.f32 1.442695, %v1604_v36  ;;  %v1605_v39 = vsub.f32 %v1597_v26, %v1603_v37 }
 0xa70   : > { %2652 = vpow2.f32 %v1606_v38  ;;  %v1608_v40 = vmul.f32 1.442695, %v1605_v39 }
 0xa71   : > { %v1671_v42 = vpop.permute.xlu1 %1670 }
 0xa72   : > { %2654 = vpow2.f32 %v1608_v40  ;;  %v1676_v43 = vsel %vm960_vm4, %v1671_v42, 0 }
 0xa73   : > { %2514 = vmatpush3.bf16.msra.mxu0 %v1676_v43  ;;  %v2614_v43 = vld [vmem:[%s2854_s3] sm:$0xff]  }
 0xa74   : > { %2527 = vmatprep.subr.bf16.mxu0 %v2696_v17 }
 0xa75   : > { %v2597_v1 = vpop.permute.xlu1 %2596 }
 0xa76   : > { %v2599_v5 = vunpack.i.h.bf16 %v2597_v1  ;;  %v2598_v6 = vunpack.i.l.bf16 %v2597_v1  ;;  %v2623_v1 = vld [vmem:[%s2864_s26 + $0x38] sm:$0xff]  }
 0xa78   : > { %v1743_v10 = vsel %vm833_vm3, %v2979_v32, %v2599_v5  ;;  %v1742_v11 = vsel %vm833_vm3, %v2977_v28, %v2598_v6  ;;  %v2334_v32 = vld [vmem:[%s3210_s24] ss:$0 sm:$0xff] }
 0xa79   : > { %v2602_v4 = vpop.permute.xlu1 %2601 }
 0xa7a   : > { %v2653_v44 = vpop.eup %2652  ;;  %v2604_v7 = vunpack.i.h.bf16 %v2602_v4  ;;  %v2603_v8 = vunpack.i.l.bf16 %v2602_v4  ;;  %v2340_v4 = vld [vmem:[%s687_s5] ss:$0 sm:$0xff] }
 0xa7b   : > { %v1610_v16 = vsel %vm833_vm3, %v2653_v44, 0.0 }
 0xa7c   : > { %v2655_v21 = vpop.eup %2654  ;;  %1611 = vadd.xlane.f32.xlu0 %v1610_v16  ;;  %v1745_v14 = vsel %vm1744_vm5, %v1742_v11, %v2603_v8  ;;  %v1746_v15 = vsel %vm1744_vm5, %v1743_v10, %v2604_v7  ;;  %v2616_v16 = vld [vmem:[%s2864_s26] sm:$0xff]  }
 0xa7d   : > { %v1613_v22 = vsel %vm833_vm3, %v2655_v21, 0.0 }
 0xa80   : > { %1614 = vadd.xlane.f32.xlu0 %v1613_v22 }
 0xa96   : > { %1622 = vrot.lane.b32.xlu0 %v2929_v41, %s2708_s25 }
 0xb09   : > { %v1612_v45 = vpop.xlane.xlu0 %1611 }
 0xb0a   : > { %2656 = vrcp.f32 %v1612_v45 }
 0xb0d   : > { %v1615_v46 = vpop.xlane.xlu0 %1614 }
 0xb0e   : > { %2658 = vrcp.f32 %v1615_v46 }
 0xb11   : > { %v1623_v47 = vpop.permute.xlu0 %1622 }
 0xb12   : > { %v1628_v48 = vsel %vm960_vm4, %v1623_v47, 0 }
 0xb13   : > { %2508 = vmatpush3.bf16.msra.mxu1 %v1628_v48 }
 0xb14   : > { %v2657_v49 = vpop.eup %2656  ;;  %2519 = vmatprep.subr.bf16.mxu1 %v2696_v17 }
 0xb15   : > { %v1618_v50 = vmul.f32 %v2657_v49, %v2653_v44  ;;  %v2615_v44 = vld [vmem:[%s2854_s3 + $0x8] sm:$0xff]  }
 0xb17   : > { %v1620_v51 = vpack.c.bf16 %v1618_v50, %v1618_v50 }
 0xb18   : > { %v2659_v52 = vpop.eup %2658 }
 0xb19   : > { %v1619_v53 = vmul.f32 %v2659_v52, %v2655_v21  ;;  %2510 = vmatmul.mubr.msk.bf16.vlgmr.msra.gmra.mrb[24].mxu1 %vm833_vm3, %v1620_v51  ;;  %v2617_v21 = vld [vmem:[%s2864_s26 + $0x8] sm:$0xff]   ;;  %v2338_v52 = vld [vmem:[%s676_s2] ss:$0 sm:$0xff] }
 0xb1a   : > { %2523 = vmatprep.mubr.msk.bf16.mxu1 %vm2697_vm2, %v2696_v17  ;;  %2520 = vmatpush3.bf16.msra.mxu1 %v2612_v54 }
 0xb1b   : > { %v1621_v41 = vpack.c.bf16 %v1619_v53, %v1619_v53  ;;  %2521 = vmatprep.subr.bf16.mxu1 %v2696_v17 }
 0xb1d   : > { %2516 = vmatmul.mubr.msk.bf16.vlgmr.msra.gmra.mrb[36].mxu0 %vm833_vm3, %v1621_v41 }
 0xb1e   : > { %2531 = vmatprep.mubr.msk.bf16.mxu0 %vm2697_vm2, %v2696_v17  ;;  %2522 = vmatpush3.bf16.msra.mxu1 %v2613_v55  ;;  %v2339_v55 = vld [vmem:[%s679_s17] ss:$0 sm:$0xff] }
 0xb1f   : > { %2535 = vmatprep.subr.bf16.mxu1 %v2696_v17  ;;  %2528 = vmatpush3.bf16.msra.mxu0 %v2614_v43 }
 0xb20   : > { %2529 = vmatprep.subr.bf16.mxu0 %v2696_v17 }
 0xb23   : > { %2530 = vmatpush3.bf16.msra.mxu0 %v2615_v44 }
 0xbec   : > { %v1664_v56 = vpop.f32.mrb[24].mxu1 }
 0xbed   : > { %v2511_v57 = vpop.f32.mrb[25].mxu1 }
 0xbee   : > { %v1667_v58 = vpop.f32.mrb[26].mxu1 }
 0xbef   : > { %v2512_v59 = vpop.f32.mrb[27].mxu1 }
 0xbf0   : > { %v1712_v60 = vpop.f32.mrb[36].mxu0 }
 0xbf1   : > { %v2605_v61 = vpack.i.bf16 %v1712_v60, %v1664_v56  ;;  %v2517_v62 = vpop.f32.mrb[37].mxu0  ;;  %v2618_v60 = vld [vmem:[%s2864_s26 + $0x10] sm:$0xff]  }
 0xbf2   : > { %v1715_v63 = vpop.f32.mrb[38].mxu0  ;;  %v2620_v62 = vld [vmem:[%s2864_s26 + $0x20] sm:$0xff]  }
 0xbf3   : > { %2606 = vrot.lane.b32.xlu0 %v2605_v61, %s2711_s21  ;;  %v2518_v0 = vpop.f32.mrb[39].mxu0  ;;  %v2619_v61 = vld [vmem:[%s2864_s26 + $0x18] sm:$0xff]   ;;  %v2621_v63 = vld [vmem:[%s2864_s26 + $0x28] sm:$0xff]  }
 0xbf4   : > { %v2622_v0 = vld [vmem:[%s2864_s26 + $0x30] sm:$0xff]  }
 0xc65   : > { %v2607_v9 = vpop.permute.xlu0 %2606 }
 0xc66   : > { %v2609_v12 = vunpack.i.h.bf16 %v2607_v9  ;;  %v2608_v13 = vunpack.i.l.bf16 %v2607_v9 }
 0xc68   : > { %v1749_v18 = vsel %vm1747_vm6, %v1746_v15, %v2609_v12  ;;  %v1748_v19 = vsel %vm1747_vm6, %v1745_v14, %v2608_v13 }
 0xc69   : > { %v1750_v20 = vpack.c.bf16 %v1749_v18, %v1748_v19 }
 0xc6b   : > { %2524 = vmatmul.mubr.msk.bf16.vlgmr.msra.gmra.mrb[28].mxu1 %vm716_vm1, %v1750_v20 }
 0xc6c   : > { %2551 = vmatprep.mubr.msk.bf16.mxu1 %vm2697_vm2, %v2696_v17  ;;  %2536 = vmatpush3.bf16.msra.mxu1 %v2616_v16 }
 0xc6d   : > { %2537 = vmatprep.subr.bf16.mxu1 %v2696_v17 }
 0xc70   : > { %2538 = vmatpush3.bf16.msra.mxu1 %v2617_v21 }
 0xc71   : > { %2539 = vmatprep.subr.bf16.mxu1 %v2696_v17 }
 0xc74   : > { %2540 = vmatpush3.bf16.msra.mxu1 %v2618_v60 }
 0xc75   : > { %2541 = vmatprep.subr.bf16.mxu1 %v2696_v17 }
 0xc78   : > { %2542 = vmatpush3.bf16.msra.mxu1 %v2619_v61 }
 0xc79   : > { %2543 = vmatprep.subr.bf16.mxu1 %v2696_v17 }
 0xc7c   : > { %2544 = vmatpush3.bf16.msra.mxu1 %v2620_v62 }
 0xc7d   : > { %2545 = vmatprep.subr.bf16.mxu1 %v2696_v17 }
 0xc80   : > { %2546 = vmatpush3.bf16.msra.mxu1 %v2621_v63 }
 0xc81   : > { %2547 = vmatprep.subr.bf16.mxu1 %v2696_v17 }
 0xc84   : > { %2548 = vmatpush3.bf16.msra.mxu1 %v2622_v0 }
 0xc85   : > { %2549 = vmatprep.subr.bf16.mxu1 %v2696_v17 }
 0xc88   : > { %2550 = vmatpush3.bf16.msra.mxu1 %v2623_v1 }
 0xd3e   : > { %v1811_v23 = vpop.f32.mrb[28].mxu1 }
 0xd3f   : > { %v1812_v24 = vadd.f32 %v2334_v32, %v1811_v23  ;;  %v2525_v28 = vpop.f32.mrb[29].mxu1 }
 0xd40   : > { %v1814_v25 = vpop.f32.mrb[30].mxu1 }
 0xd41   : > { %v3083_v26 = vadd.f32 %v1812_v24, %v2886_v2  ;;  %v1815_v27 = vadd.f32 %v2334_v32, %v1814_v25  ;;  %v2526_v29 = vpop.f32.mrb[31].mxu1  ;;  %v2344_v24 = vld [vmem:[%s695_s30] ss:$0 sm:$0xff] }
 0xd43   : > { %v3086_v30 = vadd.f32 %v1815_v27, %v2891_v3  ;;  %v1822_v31 = vsel %vm716_vm1, %v3083_v26, 0.0 }
 0xd44   : > { %1823 = vadd.xlane.f32.xlu1 %v1822_v31 }
 0xd45   : > { %v1825_v33 = vsel %vm716_vm1, %v3086_v30, 0.0 }
 0xd46   : > { %1826 = vadd.xlane.f32.xlu0 %v1825_v33 }
 0xdd1   : > { %v1824_v34 = vpop.xlane.xlu1 %1823 }
 0xdd2   : > { %v1828_v35 = vmul.f32 0.03125, %v1824_v34 }
 0xdd3   : > { %v1827_v2 = vpop.xlane.xlu0 %1826 }
 0xdd4   : > { %v1830_v36 = vsub.f32 %v3083_v26, %v1828_v35  ;;  %v1829_v37 = vmul.f32 0.03125, %v1827_v2 }
 0xdd6   : > { %v1831_v3 = vsub.f32 %v3086_v30, %v1829_v37  ;;  %v1832_v38 = vmul.f32 %v1830_v36, %v1830_v36 }
 0xdd8   : > { %v1834_v39 = vsel %vm716_vm1, %v1832_v38, 0.0  ;;  %v1833_v40 = vmul.f32 %v1831_v3, %v1831_v3 }
 0xdd9   : > { %1835 = vadd.xlane.f32.xlu0 %v1834_v39 }
 0xdda   : > { %v1837_v42 = vsel %vm716_vm1, %v1833_v40, 0.0 }
 0xddd   : > { %1838 = vadd.xlane.f32.xlu0 %v1837_v42 }
 0xe66   : > { %v1836_v22 = vpop.xlane.xlu0 %1835 }
 0xe67   : > { %v1840_v45 = vmul.f32 0.03125, %v1836_v22 }
 0xe69   : > { %v1842_v46 = vadd.f32 1e-05, %v1840_v45 }
 0xe6a   : > { %v1839_v47 = vpop.xlane.xlu0 %1838 }
 0xe6b   : > { %2660 = vrsqrt.f32 %v1842_v46  ;;  %v1841_v48 = vmul.f32 0.03125, %v1839_v47 }
 0xe6d   : > { %v1843_v49 = vadd.f32 1e-05, %v1841_v48 }
 0xe6f   : > { %2662 = vrsqrt.f32 %v1843_v49 }
 0xe75   : > { %v2661_v50 = vpop.eup %2660 }
 0xe76   : > { %v1846_v51 = vmul.f32 %v2661_v50, %v1830_v36 }
 0xe78   : > { %v1854_v41 = vmul.f32 %v2338_v52, %v1846_v51 }
 0xe79   : > { %v2663_v53 = vpop.eup %2662 }
 0xe7a   : > { %v1847_v54 = vmul.f32 %v2663_v53, %v1831_v3  ;;  %v1862_v57 = vadd.f32 %v2339_v55, %v1854_v41 }
 0xe7c   : > { %v1855_v56 = vmul.f32 %v2338_v52, %v1847_v54 }
 0xe7e   : > { %v1863_v58 = vadd.f32 %v2339_v55, %v1855_v56 }
 0xe80   : > { %v1864_v59 = vpack.c.bf16 %v1863_v58, %v1862_v57 }
 0xe82   : > { %2532 = vmatmul.mubr.msk.bf16.vlgmr.msra.gmra.mrb[40].mxu0 %vm716_vm1, %v1864_v59 }
 0xf55   : > { %v1925_v5 = vpop.f32.mrb[40].mxu0 }
 0xf56   : > { %v1926_v6 = vadd.f32 %v2340_v4, %v1925_v5  ;;  %v2533_v7 = vpop.f32.mrb[41].mxu0 }
 0xf57   : > { %v1928_v8 = vpop.f32.mrb[42].mxu0 }
 0xf58   : > { %v1934_v9 = vmul.f32 0.70710677, %v1926_v6  ;;  %v1929_v10 = vadd.f32 %v2340_v4, %v1928_v8  ;;  %v2534_v11 = vpop.f32.mrb[43].mxu0  ;;  %v1932_v15 = vmul.f32 0.5, %v1926_v6 }
 0xf5a   : > { %2664 = verf.f32 %v1934_v9  ;;  %v1935_v12 = vmul.f32 0.70710677, %v1929_v10  ;;  %v1933_v18 = vmul.f32 0.5, %v1929_v10 }
 0xf5c   : > { %2666 = verf.f32 %v1935_v12 }
 0xf64   : > { %v2665_v13 = vpop.eup %2664 }
 0xf65   : > { %v1938_v17 = vadd.f32 1.0, %v2665_v13 }
 0xf66   : > { %v2667_v14 = vpop.eup %2666 }
 0xf67   : > { %v1939_v19 = vadd.f32 1.0, %v2667_v14  ;;  %v1940_v20 = vmul.f32 %v1938_v17, %v1932_v15 }
 0xf69   : > { %v1941_v32 = vmul.f32 %v1939_v19, %v1933_v18 }
 0xf6b   : > { %v1942_v23 = vpack.c.bf16 %v1941_v32, %v1940_v20 }
 0xf6d   : > { %2552 = vmatmul.mubr.bf16.vlgmr.msra.gmra.mrb[32].mxu1 %v1942_v23 }
0x103f   : > { %2060 = sbr.rel (%p2353_p6) target bundleno = 4168 (0x1048), region = 88 }
0x1040   : > { %v2048_v28 = vpop.f32.mrb[32].mxu1 }
0x1041   : > { %v2049_v25 = vadd.f32 %v2344_v24, %v2048_v28  ;;  %v2553_v27 = vpop.f32.mrb[33].mxu1 }
0x1042   : > { %v2051_v29 = vpop.f32.mrb[34].mxu1 }
0x1043   : > { %v2055_v31 = vadd.f32 %v2049_v25, %v3083_v26  ;;  %v2052_v33 = vadd.f32 %v2344_v24, %v2051_v29  ;;  %v2554_v34 = vpop.f32.mrb[35].mxu1 }
0x1045   : > { %v2056_v35 = vadd.f32 %v2052_v33, %v3086_v30  ;;  %2061 = vst.msk [vmem:[%s3189_s15] sm:$0xff] (!%p2353_p6), %vm716_vm1, %v2055_v31 }
0x1047   : > { %2062 = vst.msk [vmem:[%s3189_s15 + $0x8] sm:$0xff] %vm716_vm1, %v2056_v35 }
0x1048 PF: > { %p2354_p7 = scmp.ne.s32.totalorder %s2686_s18, 1 }
0x1049   : > { %v2069_v26 = vsel (!%p2354_p7), %vm716_vm1, %v2055_v31, 0.0  ;;  %v2072_v30 = vsel (!%p2354_p7), %vm716_vm1, %v2056_v35, 0.0  ;;  %s3211_s27 = sld [smem:[#allocation9_spill]] (!%p2354_p7)  ;;  %s3212_s29 = sld [smem:[#allocation10_spill]] (!%p2354_p7) }
0x104a   : > { %2066 = sbr.rel (%p2354_p7) target bundleno = 4487 (0x1187), region = 92  ;;  %2070 = vadd.xlane.f32.xlu0 (!%p2354_p7), %v2069_v26 }
0x104e   : > { %2073 = vadd.xlane.f32.xlu0 (!%p2354_p7), %v2072_v30 }
0x104f   : > { %v2355_v49 = vld [vmem:[%s3211_s27] ss:$0 sm:$0xff] (!%p2354_p7) }
0x1050   : > { %v2356_v51 = vld [vmem:[%s3212_s29] ss:$0 sm:$0xff] (!%p2354_p7) }
0x10d7   : > { %v2071_v2 = vpop.xlane.xlu0 %2070 }
0x10d8   : > { %v2075_v36 = vmul.f32 0.03125, %v2071_v2 }
0x10da   : > { %v2077_v37 = vsub.f32 %v2055_v31, %v2075_v36 }
0x10db   : > { %v2074_v3 = vpop.xlane.xlu0 %2073 }
0x10dc   : > { %v2076_v38 = vmul.f32 0.03125, %v2074_v3  ;;  %v2079_v39 = vmul.f32 %v2077_v37, %v2077_v37 }
0x10de   : > { %v2078_v40 = vsub.f32 %v2056_v35, %v2076_v38  ;;  %v2081_v42 = vsel %vm716_vm1, %v2079_v39, 0.0 }
0x10df   : > { %2082 = vadd.xlane.f32.xlu1 %v2081_v42 }
0x10e0   : > { %v2080_v43 = vmul.f32 %v2078_v40, %v2078_v40 }
0x10e2   : > { %v2084_v44 = vsel %vm716_vm1, %v2080_v43, 0.0 }
0x10e3   : > { %2085 = vadd.xlane.f32.xlu1 %v2084_v44 }
0x116c   : > { %v2083_v16 = vpop.xlane.xlu1 %2082 }
0x116d   : > { %v2087_v21 = vmul.f32 0.03125, %v2083_v16 }
0x116f   : > { %v2089_v22 = vadd.f32 1e-05, %v2087_v21 }
0x1170   : > { %v2086_v45 = vpop.xlane.xlu1 %2085 }
0x1171   : > { %2668 = vrsqrt.f32 %v2089_v22  ;;  %v2088_v46 = vmul.f32 0.03125, %v2086_v45 }
0x1173   : > { %v2090_v47 = vadd.f32 1e-05, %v2088_v46 }
0x1175   : > { %2670 = vrsqrt.f32 %v2090_v47 }
0x117b   : > { %v2669_v48 = vpop.eup %2668 }
0x117c   : > { %v2093_v50 = vmul.f32 %v2669_v48, %v2077_v37 }
0x117e   : > { %v2101_v52 = vmul.f32 %v2355_v49, %v2093_v50 }
0x117f   : > { %v2671_v53 = vpop.eup %2670 }
0x1180   : > { %v2109_v41 = vadd.f32 %v2356_v51, %v2101_v52  ;;  %v2094_v54 = vmul.f32 %v2671_v53, %v2078_v40 }
0x1182   : > { %2111 = vst.msk [vmem:[%s3189_s15] sm:$0xff] %vm716_vm1, %v2109_v41  ;;  %v2102_v55 = vmul.f32 %v2355_v49, %v2094_v54 }
0x1184   : > { %v2110_v56 = vadd.f32 %v2356_v51, %v2102_v55 }
0x1186   : > { %2112 = vst.msk [vmem:[%s3189_s15 + $0x8] sm:$0xff] %vm716_vm1, %v2110_v56 }
0x1187 PF: > { %s3213_s20 = sld [smem:[#allocation3_spill]]  ;;  %s3214_s18 = sld [smem:[#allocation2_spill]] }
0x1188   : > { %s3215_s19 = sld [smem:[#allocation4_spill]] }
0x118d   : > { %s25_s20 = sadd.s32 1, %s3213_s20  }
0x118e   : > { %p22_p8 = scmp.ge.s32.totalorder %s25_s20, 4  }
0x1190   :  { %24 = sbr.rel (!%p22_p8) target bundleno = 6 (0x6), region = 158 }

</bundles_post_ra>
